<compile_context>
chip_gen: v6e
topology: v6e:2x2x1
jax: 0.10.0
libtpu: 0.0.40
codegen_flags: <defaults>
</compile_context>

<pallas_src>
import functools

import jax
import jax.numpy as jnp
from jax.experimental import pallas as pl
from jax.experimental.pallas import tpu as pltpu


# ---------------------------------------------------------------------------
# Core Pallas kernel: fused matmul + bias over im2col patches.
# ---------------------------------------------------------------------------
def _round_up(x, m):
    return ((x + m - 1) // m) * m


def _matmul_bias_kernel(x_ref, w_ref, b_ref, o_ref):
    acc = jnp.dot(x_ref[...], w_ref[...], preferred_element_type=jnp.float32)
    o_ref[...] = (acc + b_ref[...]).astype(o_ref.dtype)


def matmul_bias_pallas(x, w, b, *, tm=256):
    """y = x @ w + b  with x:(M,K), w:(K,N), b:(N,), all float32."""
    M, K = x.shape
    N = w.shape[1]
    Kp = _round_up(K, 128)                       # lane-dense K
    Np = _round_up(N, 128)                       # lane-dense (unmasked) stores
    tm = max(8, min(_round_up(tm, 8), _round_up(M, 8)))
    Mp = _round_up(M, tm)
    xp = jnp.pad(x, ((0, Mp - M), (0, Kp - K)))  # zero padding: no garbage rows
    wp = jnp.pad(w, ((0, Kp - K), (0, Np - N)))
    bp = jnp.pad(b.reshape(1, -1), ((0, 0), (0, Np - N)))

    cost = pl.CostEstimate(
        flops=2 * Mp * Kp * Np,
        transcendentals=0,
        bytes_accessed=4 * (Mp * Kp + Kp * Np + Np + Mp * Np),
    )
    out = pl.pallas_call(
        _matmul_bias_kernel,
        out_shape=jax.ShapeDtypeStruct((Mp, Np), x.dtype),
        grid_spec=pltpu.PrefetchScalarGridSpec(
            num_scalar_prefetch=0,
            grid=(Mp // tm,),
            in_specs=[
                pl.BlockSpec((tm, Kp), lambda i: (i, 0)),   # activation tile
                pl.BlockSpec((Kp, Np), lambda i: (0, 0)),   # weight, resident
                pl.BlockSpec((1, Np), lambda i: (0, 0)),    # bias
            ],
            out_specs=pl.BlockSpec((tm, Np), lambda i: (i, 0)),
        ),
        compiler_params=pltpu.CompilerParams(
            dimension_semantics=("parallel",)),
        cost_estimate=cost,
    )(xp, wp, bp)
    return out[:M, :N]


# ---------------------------------------------------------------------------
# Convolution wrappers (PyTorch OIHW weights, NHWC activations).
# ---------------------------------------------------------------------------
def _im2col(x, kh, kw, stride, padding):
    if padding:
        x = jnp.pad(x, ((0, 0), (padding, padding), (padding, padding), (0, 0)))
    hp, wp = x.shape[1], x.shape[2]
    ho = (hp - kh) // stride + 1
    wo = (wp - kw) // stride + 1
    cols = []
    for i in range(kh):
        for j in range(kw):
            cols.append(x[:, i:i + (ho - 1) * stride + 1:stride,
                            j:j + (wo - 1) * stride + 1:stride, :])
    return jnp.concatenate(cols, axis=-1), ho, wo


def conv2d(x, w, b=None, *, stride=1, padding=0, impl="pallas"):
    """nn.Conv2d forward. x: (B,H,W,Cin) NHWC, w: (Cout,Cin,kh,kw)."""
    cout, cin, kh, kw = w.shape
    if impl == "xla_conv":                       # structural reference path
        y = jax.lax.conv_general_dilated(
            x, jnp.transpose(w, (2, 3, 1, 0)),
            window_strides=(stride, stride),
            padding=[(padding, padding), (padding, padding)],
            dimension_numbers=("NHWC", "HWIO", "NHWC"))
        return y if b is None else y + b
    cols, ho, wo = _im2col(x, kh, kw, stride, padding)
    m = x.shape[0] * ho * wo
    x2d = cols.reshape(m, kh * kw * cin)
    wmat = jnp.transpose(w, (2, 3, 1, 0)).reshape(kh * kw * cin, cout)
    bvec = jnp.zeros((cout,), x.dtype) if b is None else b
    if impl == "pallas" and m >= 8:
        y2d = matmul_bias_pallas(x2d, wmat, bvec)
    else:
        # pooled (B,1,1,C) attention convs: too small for a kernel launch
        y2d = jnp.dot(x2d, wmat) + bvec
    return y2d.reshape(x.shape[0], ho, wo, cout)


# ---------------------------------------------------------------------------
# Module glue (matches the PyTorch submodules of MSRB).
# ---------------------------------------------------------------------------
def _prelu(x, a):
    return jnp.where(x >= 0, x, a * x)


def _antialias_down2(x):
    """Downsample_antialias(filt_size=3, stride=2, reflect pad 1)."""
    xp = jnp.pad(x, ((0, 0), (1, 1), (1, 1), (0, 0)), mode="reflect")
    ho = (xp.shape[1] - 3) // 2 + 1
    wo = (xp.shape[2] - 3) // 2 + 1
    taps = (0.25, 0.5, 0.25)                     # [1,2,1]/4 (separable /16)
    t = sum(taps[i] * xp[:, i:i + 2 * ho - 1:2, :, :] for i in range(3))
    return sum(taps[j] * t[:, :, j:j + 2 * wo - 1:2, :] for j in range(3))


def _bilinear_up2(x):
    """nn.Upsample(scale_factor=2, mode='bilinear', align_corners=False)."""
    _, H, W, _ = x.shape

    def grid1d(n):
        src = (jnp.arange(2 * n, dtype=jnp.float32) + 0.5) * 0.5 - 0.5
        src = jnp.clip(src, 0.0, n - 1.0)
        i0 = jnp.floor(src).astype(jnp.int32)
        i1 = jnp.minimum(i0 + 1, n - 1)
        return i0, i1, src - i0.astype(jnp.float32)

    hi0, hi1, hf = grid1d(H)
    wi0, wi1, wf = grid1d(W)
    xh = (x[:, hi0] * (1.0 - hf)[None, :, None, None]
          + x[:, hi1] * hf[None, :, None, None])
    return (xh[:, :, wi0] * (1.0 - wf)[None, None, :, None]
            + xh[:, :, wi1] * wf[None, None, :, None])


def _conv_transpose3x3_s2(x, w, impl):
    """ConvTranspose2d(C,C,3,stride=2,pad=1,output_pad=1,bias=False)."""
    B, H, W, C = x.shape
    z = jnp.zeros((B, 2 * H - 1, 2 * W - 1, C), x.dtype).at[:, ::2, ::2, :].set(x)
    z = jnp.pad(z, ((0, 0), (1, 2), (1, 2), (0, 0)))
    wf = jnp.transpose(w, (1, 0, 2, 3))[:, :, ::-1, ::-1]   # (Cout,Cin,3,3) flipped
    return conv2d(z, wf, impl=impl)


def _dau(p, act_a, x, impl):
    """DAU: conv3x3 -> PReLU -> conv3x3, spatial + channel attention, 1x1, +x."""
    cv = functools.partial(conv2d, impl=impl)
    r = _prelu(cv(x, p["body1_w"], padding=1), act_a)
    r = cv(r, p["body2_w"], padding=1)
    # spatial attention (ChannelPool -> 5x5 conv -> sigmoid)
    pool = jnp.concatenate([jnp.max(r, axis=-1, keepdims=True),
                            jnp.mean(r, axis=-1, keepdims=True)], axis=-1)
    sa = r * jax.nn.sigmoid(cv(pool, p["sa_w"], padding=2))
    # channel attention (SE: avgpool -> 1x1 -> ReLU -> 1x1 -> sigmoid)
    y = jnp.mean(r, axis=(1, 2), keepdims=True)
    y = jax.nn.relu(cv(y, p["ca1_w"]))
    ca = r * jax.nn.sigmoid(cv(y, p["ca2_w"]))
    return cv(jnp.concatenate([sa, ca], axis=-1), p["conv1x1_w"]) + x


def _residual_downsample(p, x, impl):
    cv = functools.partial(conv2d, impl=impl)
    t = _prelu(cv(x, p["top1_w"]), p["top_a1"])
    t = _prelu(cv(t, p["top2_w"], padding=1), p["top_a2"])
    t = cv(_antialias_down2(t), p["top3_w"])
    bt = cv(_antialias_down2(x), p["bot1_w"])
    return t + bt


def _residual_upsample(p, x, impl):
    cv = functools.partial(conv2d, impl=impl)
    t = _prelu(cv(x, p["top1_w"]), p["top_a1"])
    t = _prelu(_conv_transpose3x3_s2(t, p["topct_w"], impl), p["top_a2"])
    t = cv(t, p["top3_w"])
    bt = cv(_bilinear_up2(x), p["bot1_w"])
    return t + bt


def _skff(p, feats, impl):
    cv = functools.partial(conv2d, impl=impl)
    u = feats[0]
    for f in feats[1:]:
        u = u + f
    s = jnp.mean(u, axis=(1, 2), keepdims=True)              # (B,1,1,C)
    z = _prelu(cv(s, p["du_w"]), p["du_a"])                   # (B,1,1,d)
    att = jnp.stack([cv(z, w) for w in p["fc_ws"]], axis=1)   # (B,h,1,1,C)
    att = jax.nn.softmax(att, axis=1)
    out = feats[0] * att[:, 0]
    for i in range(1, len(feats)):
        out = out + feats[i] * att[:, i]
    return out


# ---------------------------------------------------------------------------
# MSRB forward (height=2, width=2, stride=2) — matches MSRB.forward exactly.
# ---------------------------------------------------------------------------
def msrb_forward(params, x_nchw, impl):
    x = jnp.transpose(x_nchw, (0, 2, 3, 1)).astype(jnp.float32)   # NHWC
    act_a = params["act_a"]        # shared default-arg PReLU of all DAU bodies
    # first column: DAU at each scale (blocks[j][0]); down['8_2'] feeds level 1
    b0 = _dau(params["dau0"], act_a, x, impl)
    b1 = _dau(params["dau1"], act_a,
              _residual_downsample(params["down_8_2"], b0, impl), impl)
    # width step i=1: cross-scale SKFF fusion, then the (weight-shared) DAUs
    t0 = _skff(params["skff0"],
               [b0, _residual_upsample(params["up_16_2"], b1, impl)], impl)
    t1 = _skff(params["skff1"],
               [_residual_downsample(params["down_8_2"], b0, impl), b1], impl)
    b0 = _dau(params["dau0"], act_a, t0, impl)
    b1 = _dau(params["dau1"], act_a, t1, impl)
    # last_up + final SKFF + conv_out + residual
    out = _skff(params["skff0"],
                [b0, _residual_upsample(params["last_up1"], b1, impl)], impl)
    out = conv2d(out, params["conv_out_w"], padding=1, impl=impl)
    out = out + x
    return jnp.transpose(out, (0, 3, 1, 2))                       # back to NCHW


@jax.jit
def msrb_pallas(params, x):
    return msrb_forward(params, x, "pallas")


@jax.jit
def msrb_ref_dot(params, x):       # same math, Pallas matmul -> XLA dot
    return msrb_forward(params, x, "xla_dot")


@jax.jit
def msrb_ref_conv(params, x):      # convs via lax.conv (checks im2col/layout)
    return msrb_forward(params, x, "xla_conv")


# ---------------------------------------------------------------------------
# Synthetic parameters (PyTorch layouts; bias=False as in the default config).
# ---------------------------------------------------------------------------
def init_params(key, n_feat=8, height=2):
    c0, c1 = n_feat, 2 * n_feat
    kit = iter(jax.random.split(key, 48))

    def nw(*shape):
        return 0.1 * jax.random.normal(next(kit), shape, jnp.float32)

    def a():   # PReLU slope, PyTorch default init
        return jnp.asarray(0.25, dtype=jnp.float32)

    def dau_p(c):
        r = max(c // 8, 1)
        return dict(body1_w=nw(c, c, 3, 3), body2_w=nw(c, c, 3, 3),
                    sa_w=nw(1, 2, 5, 5),
                    ca1_w=nw(r, c, 1, 1), ca2_w=nw(c, r, 1, 1),
                    conv1x1_w=nw(c, 2 * c, 1, 1))

    def rds_p(c):
        return dict(top1_w=nw(c, c, 1, 1), top_a1=a(),
                    top2_w=nw(c, c, 3, 3), top_a2=a(),
                    top3_w=nw(2 * c, c, 1, 1), bot1_w=nw(2 * c, c, 1, 1))

    def rus_p(c):
        return dict(top1_w=nw(c, c, 1, 1), top_a1=a(),
                    topct_w=nw(c, c, 3, 3),        # ConvTranspose2d (Cin,Cout,3,3)
                    top_a2=a(),
                    top3_w=nw(c // 2, c, 1, 1), bot1_w=nw(c // 2, c, 1, 1))

    def skff_p(c):
        d = max(c // 8, 4)
        return dict(du_w=nw(d, c, 1, 1), du_a=a(),
                    fc_ws=[nw(c, d, 1, 1) for _ in range(height)])

    return dict(act_a=a(),
                dau0=dau_p(c0), dau1=dau_p(c1),
                down_8_2=rds_p(c0), up_16_2=rus_p(c1), last_up1=rus_p(c1),
                skff0=skff_p(c0), skff1=skff_p(c1),
                conv_out_w=nw(c0, c0, 3, 3))


if __name__ == "__main__":
    # n_feat must be >= 8 so the DAU channel-attention (reduction=8) is valid.
    B, n_feat, H, W = 2, 8, 16, 16
    key = jax.random.PRNGKey(0)
    kparams, kx = jax.random.split(key)
    params = init_params(kparams, n_feat=n_feat)
    x = jax.random.normal(kx, (B, n_feat, H, W), dtype=jnp.float32)

    out = jax.block_until_ready(msrb_pallas(params, x))
    assert out.shape == x.shape

    # Tight check: identical math with the Pallas matmul swapped for XLA dot.
    ref_dot = jax.block_until_ready(msrb_ref_dot(params, x))
    assert jnp.allclose(out, ref_dot, atol=1e-3, rtol=1e-3), (
        float(jnp.max(jnp.abs(out - ref_dot))))

    # Structural check: convolutions computed with lax.conv_general_dilated
    # (validates im2col ordering / padding / weight layout; looser tolerance
    # to absorb conv-vs-matmul f32 precision-policy differences).
    ref_conv = jax.block_until_ready(msrb_ref_conv(params, x))
    assert jnp.allclose(out, ref_conv, atol=3e-2, rtol=3e-2), (
        float(jnp.max(jnp.abs(out - ref_conv))))

    print("KERNEL_OK")
</pallas_src>

<mosaic_0001>
module attributes {stable_mosaic.version = 11 : i64} {
  func.func @_matmul_bias_kernel(%arg0: i32, %arg1: memref<256x128xf32, #tpu.memory_space<vmem>>, %arg2: memref<128x128xf32, #tpu.memory_space<vmem>>, %arg3: memref<1x128xf32, #tpu.memory_space<vmem>>, %arg4: memref<256x128xf32, #tpu.memory_space<vmem>>) attributes {dimension_semantics = [#tpu.dimension_semantics<parallel>], iteration_bounds = array<i64: 2>, scalar_prefetch = 0 : i64, scratch_operands = 0 : i64, tpu.core_type = #tpu.core_type<tc>, window_params = [{transform_indices = @transform_0, window_bounds = array<i64: 256, 128>}, {pipeline_mode = #tpu.pipeline_mode<synchronous>, transform_indices = @transform_1, window_bounds = array<i64: 128, 128>}, {pipeline_mode = #tpu.pipeline_mode<synchronous>, transform_indices = @transform_2, window_bounds = array<i64: 1, 128>}, {transform_indices = @transform_3, window_bounds = array<i64: 256, 128>}]} {
    %c0 = arith.constant 0 : index
    %c0_0 = arith.constant 0 : index
    %0 = vector.load %arg1[%c0, %c0_0] : memref<256x128xf32, #tpu.memory_space<vmem>>, vector<256x128xf32>
    %c0_1 = arith.constant 0 : index
    %c0_2 = arith.constant 0 : index
    %1 = vector.load %arg2[%c0_1, %c0_2] : memref<128x128xf32, #tpu.memory_space<vmem>>, vector<128x128xf32>
    %cst = arith.constant dense<0.000000e+00> : vector<256x128xf32>
    %2 = tpu.matmul %0, %1, %cst {dimension_numbers = #tpu.dot_dimension_numbers<[1], [0], [0], [1], [0, 0, 1, 1], [], []>} : vector<256x128xf32>, vector<128x128xf32>, vector<256x128xf32> -> vector<256x128xf32>
    %c0_3 = arith.constant 0 : index
    %c0_4 = arith.constant 0 : index
    %3 = vector.load %arg3[%c0_3, %c0_4] : memref<1x128xf32, #tpu.memory_space<vmem>>, vector<1x128xf32>
    %4 = vector.broadcast %3 : vector<1x128xf32> to vector<256x128xf32>
    %5 = arith.addf %2, %4 : vector<256x128xf32>
    %c0_5 = arith.constant 0 : index
    %c0_6 = arith.constant 0 : index
    %6 = vector.load %arg4[%c0_5, %c0_6] : memref<256x128xf32, #tpu.memory_space<vmem>>, vector<256x128xf32>
    tpu.vector_store %arg4[%c0_5, %c0_6], %5 {strides = array<i32>} : memref<256x128xf32, #tpu.memory_space<vmem>>, vector<256x128xf32>,
    return
  }
  func.func @transform_0(%arg0: i32) -> (i32, i32) {
    %c0_i32 = arith.constant 0 : i32
    %c0_i32_0 = arith.constant 0 : i32
    return %arg0, %c0_i32 : i32, i32
  }
  func.func @transform_1(%arg0: i32) -> (i32, i32) {
    %c0_i32 = arith.constant 0 : i32
    %c0_i32_0 = arith.constant 0 : i32
    %c0_i32_1 = arith.constant 0 : i32
    return %c0_i32, %c0_i32_0 : i32, i32
  }
  func.func @transform_2(%arg0: i32) -> (i32, i32) {
    %c0_i32 = arith.constant 0 : i32
    %c0_i32_0 = arith.constant 0 : i32
    %c0_i32_1 = arith.constant 0 : i32
    return %c0_i32, %c0_i32_0 : i32, i32
  }
  func.func @transform_3(%arg0: i32) -> (i32, i32) {
    %c0_i32 = arith.constant 0 : i32
    %c0_i32_0 = arith.constant 0 : i32
    return %arg0, %c0_i32 : i32, i32
  }
}

module attributes {stable_mosaic.version = 11 : i64} {
  func.func @_matmul_bias_kernel(%arg0: i32, %arg1: memref<128x128xf32, #tpu.memory_space<vmem>>, %arg2: memref<128x128xf32, #tpu.memory_space<vmem>>, %arg3: memref<1x128xf32, #tpu.memory_space<vmem>>, %arg4: memref<128x128xf32, #tpu.memory_space<vmem>>) attributes {dimension_semantics = [#tpu.dimension_semantics<parallel>], iteration_bounds = array<i64: 1>, scalar_prefetch = 0 : i64, scratch_operands = 0 : i64, tpu.core_type = #tpu.core_type<tc>, window_params = [{transform_indices = @transform_0, window_bounds = array<i64: 128, 128>}, {pipeline_mode = #tpu.pipeline_mode<synchronous>, transform_indices = @transform_1, window_bounds = array<i64: 128, 128>}, {pipeline_mode = #tpu.pipeline_mode<synchronous>, transform_indices = @transform_2, window_bounds = array<i64: 1, 128>}, {transform_indices = @transform_3, window_bounds = array<i64: 128, 128>}]} {
    %c0 = arith.constant 0 : index
    %c0_0 = arith.constant 0 : index
    %0 = vector.load %arg1[%c0, %c0_0] : memref<128x128xf32, #tpu.memory_space<vmem>>, vector<128x128xf32>
    %c0_1 = arith.constant 0 : index
    %c0_2 = arith.constant 0 : index
    %1 = vector.load %arg2[%c0_1, %c0_2] : memref<128x128xf32, #tpu.memory_space<vmem>>, vector<128x128xf32>
    %cst = arith.constant dense<0.000000e+00> : vector<128x128xf32>
    %2 = tpu.matmul %0, %1, %cst {dimension_numbers = #tpu.dot_dimension_numbers<[1], [0], [0], [1], [0, 0, 1, 1], [], []>} : vector<128x128xf32>, vector<128x128xf32>, vector<128x128xf32> -> vector<128x128xf32>
    %c0_3 = arith.constant 0 : index
    %c0_4 = arith.constant 0 : index
    %3 = vector.load %arg3[%c0_3, %c0_4] : memref<1x128xf32, #tpu.memory_space<vmem>>, vector<1x128xf32>
    %4 = vector.broadcast %3 : vector<1x128xf32> to vector<128x128xf32>
    %5 = arith.addf %2, %4 : vector<128x128xf32>
    %c0_5 = arith.constant 0 : index
    %c0_6 = arith.constant 0 : index
    %6 = vector.load %arg4[%c0_5, %c0_6] : memref<128x128xf32, #tpu.memory_space<vmem>>, vector<128x128xf32>
    tpu.vector_store %arg4[%c0_5, %c0_6], %5 {strides = array<i32>} : memref<128x128xf32, #tpu.memory_space<vmem>>, vector<128x128xf32>,
    return
  }
  func.func @transform_0(%arg0: i32) -> (i32, i32) {
    %c0_i32 = arith.constant 0 : i32
    %c0_i32_0 = arith.constant 0 : i32
    return %arg0, %c0_i32 : i32, i32
  }
  func.func @transform_1(%arg0: i32) -> (i32, i32) {
    %c0_i32 = arith.constant 0 : i32
    %c0_i32_0 = arith.constant 0 : i32
    %c0_i32_1 = arith.constant 0 : i32
    return %c0_i32, %c0_i32_0 : i32, i32
  }
  func.func @transform_2(%arg0: i32) -> (i32, i32) {
    %c0_i32 = arith.constant 0 : i32
    %c0_i32_0 = arith.constant 0 : i32
    %c0_i32_1 = arith.constant 0 : i32
    return %c0_i32, %c0_i32_0 : i32, i32
  }
  func.func @transform_3(%arg0: i32) -> (i32, i32) {
    %c0_i32 = arith.constant 0 : i32
    %c0_i32_0 = arith.constant 0 : i32
    return %arg0, %c0_i32 : i32, i32
  }
}

module attributes {stable_mosaic.version = 11 : i64} {
  func.func @_matmul_bias_kernel(%arg0: i32, %arg1: memref<128x256xf32, #tpu.memory_space<vmem>>, %arg2: memref<256x128xf32, #tpu.memory_space<vmem>>, %arg3: memref<1x128xf32, #tpu.memory_space<vmem>>, %arg4: memref<128x128xf32, #tpu.memory_space<vmem>>) attributes {dimension_semantics = [#tpu.dimension_semantics<parallel>], iteration_bounds = array<i64: 1>, scalar_prefetch = 0 : i64, scratch_operands = 0 : i64, tpu.core_type = #tpu.core_type<tc>, window_params = [{transform_indices = @transform_0, window_bounds = array<i64: 128, 256>}, {pipeline_mode = #tpu.pipeline_mode<synchronous>, transform_indices = @transform_1, window_bounds = array<i64: 256, 128>}, {pipeline_mode = #tpu.pipeline_mode<synchronous>, transform_indices = @transform_2, window_bounds = array<i64: 1, 128>}, {transform_indices = @transform_3, window_bounds = array<i64: 128, 128>}]} {
    %c0 = arith.constant 0 : index
    %c0_0 = arith.constant 0 : index
    %0 = vector.load %arg1[%c0, %c0_0] : memref<128x256xf32, #tpu.memory_space<vmem>>, vector<128x256xf32>
    %c0_1 = arith.constant 0 : index
    %c0_2 = arith.constant 0 : index
    %1 = vector.load %arg2[%c0_1, %c0_2] : memref<256x128xf32, #tpu.memory_space<vmem>>, vector<256x128xf32>
    %cst = arith.constant dense<0.000000e+00> : vector<128x128xf32>
    %2 = tpu.matmul %0, %1, %cst {dimension_numbers = #tpu.dot_dimension_numbers<[1], [0], [0], [1], [0, 0, 1, 1], [], []>} : vector<128x256xf32>, vector<256x128xf32>, vector<128x128xf32> -> vector<128x128xf32>
    %c0_3 = arith.constant 0 : index
    %c0_4 = arith.constant 0 : index
    %3 = vector.load %arg3[%c0_3, %c0_4] : memref<1x128xf32, #tpu.memory_space<vmem>>, vector<1x128xf32>
    %4 = vector.broadcast %3 : vector<1x128xf32> to vector<128x128xf32>
    %5 = arith.addf %2, %4 : vector<128x128xf32>
    %c0_5 = arith.constant 0 : index
    %c0_6 = arith.constant 0 : index
    %6 = vector.load %arg4[%c0_5, %c0_6] : memref<128x128xf32, #tpu.memory_space<vmem>>, vector<128x128xf32>
    tpu.vector_store %arg4[%c0_5, %c0_6], %5 {strides = array<i32>} : memref<128x128xf32, #tpu.memory_space<vmem>>, vector<128x128xf32>,
    return
  }
  func.func @transform_0(%arg0: i32) -> (i32, i32) {
    %c0_i32 = arith.constant 0 : i32
    %c0_i32_0 = arith.constant 0 : i32
    return %arg0, %c0_i32 : i32, i32
  }
  func.func @transform_1(%arg0: i32) -> (i32, i32) {
    %c0_i32 = arith.constant 0 : i32
    %c0_i32_0 = arith.constant 0 : i32
    %c0_i32_1 = arith.constant 0 : i32
    return %c0_i32, %c0_i32_0 : i32, i32
  }
  func.func @transform_2(%arg0: i32) -> (i32, i32) {
    %c0_i32 = arith.constant 0 : i32
    %c0_i32_0 = arith.constant 0 : i32
    %c0_i32_1 = arith.constant 0 : i32
    return %c0_i32, %c0_i32_0 : i32, i32
  }
  func.func @transform_3(%arg0: i32) -> (i32, i32) {
    %c0_i32 = arith.constant 0 : i32
    %c0_i32_0 = arith.constant 0 : i32
    return %arg0, %c0_i32 : i32, i32
  }
}

module attributes {stable_mosaic.version = 11 : i64} {
  func.func @_matmul_bias_kernel(%arg0: i32, %arg1: memref<256x256xf32, #tpu.memory_space<vmem>>, %arg2: memref<256x128xf32, #tpu.memory_space<vmem>>, %arg3: memref<1x128xf32, #tpu.memory_space<vmem>>, %arg4: memref<256x128xf32, #tpu.memory_space<vmem>>) attributes {dimension_semantics = [#tpu.dimension_semantics<parallel>], iteration_bounds = array<i64: 2>, scalar_prefetch = 0 : i64, scratch_operands = 0 : i64, tpu.core_type = #tpu.core_type<tc>, window_params = [{transform_indices = @transform_0, window_bounds = array<i64: 256, 256>}, {pipeline_mode = #tpu.pipeline_mode<synchronous>, transform_indices = @transform_1, window_bounds = array<i64: 256, 128>}, {pipeline_mode = #tpu.pipeline_mode<synchronous>, transform_indices = @transform_2, window_bounds = array<i64: 1, 128>}, {transform_indices = @transform_3, window_bounds = array<i64: 256, 128>}]} {
    %c0 = arith.constant 0 : index
    %c0_0 = arith.constant 0 : index
    %0 = vector.load %arg1[%c0, %c0_0] : memref<256x256xf32, #tpu.memory_space<vmem>>, vector<256x256xf32>
    %c0_1 = arith.constant 0 : index
    %c0_2 = arith.constant 0 : index
    %1 = vector.load %arg2[%c0_1, %c0_2] : memref<256x128xf32, #tpu.memory_space<vmem>>, vector<256x128xf32>
    %cst = arith.constant dense<0.000000e+00> : vector<256x128xf32>
    %2 = tpu.matmul %0, %1, %cst {dimension_numbers = #tpu.dot_dimension_numbers<[1], [0], [0], [1], [0, 0, 1, 1], [], []>} : vector<256x256xf32>, vector<256x128xf32>, vector<256x128xf32> -> vector<256x128xf32>
    %c0_3 = arith.constant 0 : index
    %c0_4 = arith.constant 0 : index
    %3 = vector.load %arg3[%c0_3, %c0_4] : memref<1x128xf32, #tpu.memory_space<vmem>>, vector<1x128xf32>
    %4 = vector.broadcast %3 : vector<1x128xf32> to vector<256x128xf32>
    %5 = arith.addf %2, %4 : vector<256x128xf32>
    %c0_5 = arith.constant 0 : index
    %c0_6 = arith.constant 0 : index
    %6 = vector.load %arg4[%c0_5, %c0_6] : memref<256x128xf32, #tpu.memory_space<vmem>>, vector<256x128xf32>
    tpu.vector_store %arg4[%c0_5, %c0_6], %5 {strides = array<i32>} : memref<256x128xf32, #tpu.memory_space<vmem>>, vector<256x128xf32>,
    return
  }
  func.func @transform_0(%arg0: i32) -> (i32, i32) {
    %c0_i32 = arith.constant 0 : i32
    %c0_i32_0 = arith.constant 0 : i32
    return %arg0, %c0_i32 : i32, i32
  }
  func.func @transform_1(%arg0: i32) -> (i32, i32) {
    %c0_i32 = arith.constant 0 : i32
    %c0_i32_0 = arith.constant 0 : i32
    %c0_i32_1 = arith.constant 0 : i32
    return %c0_i32, %c0_i32_0 : i32, i32
  }
  func.func @transform_2(%arg0: i32) -> (i32, i32) {
    %c0_i32 = arith.constant 0 : i32
    %c0_i32_0 = arith.constant 0 : i32
    %c0_i32_1 = arith.constant 0 : i32
    return %c0_i32, %c0_i32_0 : i32, i32
  }
  func.func @transform_3(%arg0: i32) -> (i32, i32) {
    %c0_i32 = arith.constant 0 : i32
    %c0_i32_0 = arith.constant 0 : i32
    return %arg0, %c0_i32 : i32, i32
  }
}

</mosaic_0001>

<bundles_post_ra>
// kernel: msrb_pallas.33
= control target key start
LH: loop header
LB: loop body
LE: loop exit
PB: predicated region body
PF: predicated region fallthrough
CT: control target
= control target key end

     0   :  { %s750_s12 = smov 0   ;;  %s929_s0 = inlined_call_operand.vmem [shape: f32[512,128], index: 0, kind: input, shape index: {}]   ;;  %s930_s1 = inlined_call_operand.vmem [shape: f32[128,128], index: 1, kind: input, shape index: {}]   ;;  %s931_s2 = inlined_call_operand.vmem [shape: f32[1,128], index: 2, kind: input, shape index: {}]   ;;  %s932_s3 = inlined_call_operand.vmem [shape: f32[512,128], index: 3, kind: output, shape index: {}]  }
   0x1 LB: > { %s542_s13 = sadd.s32 4294967295, %s728_s12   ;;  %p546_p0 = scmp.ge.s32.totalorder %s728_s12, 1  ;;  %s728_s12 = sphi %s750_s12, %s13_s12  }
   0x2   : > { %p138_p1 = scmp.lt.s32.totalorder %s728_s12, 3 }
   0x4   : > { %p139_p2 = pnand %p546_p0, %p138_p1 }
   0x5   : > { %s547_s30 = sshll.u32 (!%p139_p2), %s542_s13, 5 }
   0x6   : > { %142 = sbr.rel (%p139_p2) target bundleno = 271 (0x10f), region = 32  ;;  %p163_p3 = scmp.lt.s32.totalorder (!%p139_p2), %s547_s30, 63 }
   0xb   : > { %v221_v0 = vld [vmem:[%s930_s1 + $0x78] sm:$0xff]  ;;  %v220_v1 = vld [vmem:[%s930_s1 + $0x70] sm:$0xff]  ;;  %v219_v2 = vld [vmem:[%s930_s1 + $0x68] sm:$0xff]  ;;  %s934_s30 = smov (!%p163_p3, %s547_s30), 63 }
   0xc   : > { %602 = vmatprep.subr.mxu0 %v221_v0  ;;  %682 = vmatprep.subr.mxu1 %v221_v0  ;;  %v218_v3 = vld [vmem:[%s930_s1 + $0x60] sm:$0xff]  ;;  %v217_v4 = vld [vmem:[%s930_s1 + $0x58] sm:$0xff]  ;;  %v216_v5 = vld [vmem:[%s930_s1 + $0x50] sm:$0xff]  ;;  %s548_s17 = sshll.u32 %s934_s30, 3 }
   0xd   : > { %603 = vmatpush3.msra.mxu0 %v221_v0  ;;  %698 = vmatpush3.msra.mxu1 %v221_v0  ;;  %v215_v6 = vld [vmem:[%s930_s1 + $0x48] sm:$0xff]  ;;  %v214_v7 = vld [vmem:[%s930_s1 + $0x40] sm:$0xff]  ;;  %v213_v8 = vld [vmem:[%s930_s1 + $0x38] sm:$0xff]  ;;  %s813_s22 = scalar_lea.vmem %s929_s0, %s548_s17  ;;  %s860_s29 = scalar_lea.vmem %s932_s3, %s548_s17 }
   0xe   : > { %604 = vmatprep.subr.mxu0 %v220_v1  ;;  %683 = vmatprep.subr.mxu1 %v220_v1  ;;  %v212_v9 = vld [vmem:[%s930_s1 + $0x30] sm:$0xff]  ;;  %v211_v10 = vld [vmem:[%s930_s1 + $0x28] sm:$0xff]  ;;  %v210_v11 = vld [vmem:[%s930_s1 + $0x20] sm:$0xff] }
   0xf   : > { %605 = vmatpush3.msra.mxu0 %v220_v1  ;;  %699 = vmatpush3.msra.mxu1 %v220_v1  ;;  %v209_v12 = vld [vmem:[%s930_s1 + $0x18] sm:$0xff]  ;;  %v208_v13 = vld [vmem:[%s930_s1 + $0x10] sm:$0xff]  ;;  %v207_v14 = vld [vmem:[%s930_s1 + $0x8] sm:$0xff] }
  0x10   : > { %606 = vmatprep.subr.mxu0 %v219_v2  ;;  %684 = vmatprep.subr.mxu1 %v219_v2  ;;  %v206_v15 = vld [vmem:[%s930_s1] sm:$0xff]  ;;  %v175_v18 = vld [vmem:[%s813_s22 + $0x8] sm:$0xff]  ;;  %v176_v20 = vld [vmem:[%s813_s22 + $0x10] sm:$0xff] }
  0x11   : > { %607 = vmatpush3.msra.mxu0 %v219_v2  ;;  %700 = vmatpush3.msra.mxu1 %v219_v2  ;;  %v174_v16 = vld [vmem:[%s813_s22] sm:$0xff]  ;;  %v191_v19 = vld [vmem:[%s813_s22 + $0x88] sm:$0xff]  ;;  %v192_v21 = vld [vmem:[%s813_s22 + $0x90] sm:$0xff] }
  0x12   : > { %608 = vmatprep.subr.mxu0 %v218_v3  ;;  %685 = vmatprep.subr.mxu1 %v218_v3  ;;  %v190_v17 = vld [vmem:[%s813_s22 + $0x80] sm:$0xff]  ;;  %v177_v22 = vld [vmem:[%s813_s22 + $0x18] sm:$0xff]  ;;  %v179_v26 = vld [vmem:[%s813_s22 + $0x28] sm:$0xff] }
  0x13   : > { %609 = vmatpush3.msra.mxu0 %v218_v3  ;;  %701 = vmatpush3.msra.mxu1 %v218_v3  ;;  %v193_v23 = vld [vmem:[%s813_s22 + $0x98] sm:$0xff]  ;;  %v178_v24 = vld [vmem:[%s813_s22 + $0x20] sm:$0xff]  ;;  %v195_v27 = vld [vmem:[%s813_s22 + $0xa8] sm:$0xff] }
  0x14   : > { %610 = vmatprep.subr.mxu0 %v217_v4  ;;  %686 = vmatprep.subr.mxu1 %v217_v4  ;;  %v194_v25 = vld [vmem:[%s813_s22 + $0xa0] sm:$0xff]  ;;  %v180_v28 = vld [vmem:[%s813_s22 + $0x30] sm:$0xff]  ;;  %v181_v30 = vld [vmem:[%s813_s22 + $0x38] sm:$0xff] }
  0x15   : > { %611 = vmatpush3.msra.mxu0 %v217_v4  ;;  %702 = vmatpush3.msra.mxu1 %v217_v4  ;;  %v196_v29 = vld [vmem:[%s813_s22 + $0xb0] sm:$0xff]  ;;  %v197_v31 = vld [vmem:[%s813_s22 + $0xb8] sm:$0xff]  ;;  %v182_v32 = vld [vmem:[%s813_s22 + $0x40] sm:$0xff] }
  0x16   : > { %612 = vmatprep.subr.mxu0 %v216_v5  ;;  %687 = vmatprep.subr.mxu1 %v216_v5  ;;  %v198_v33 = vld [vmem:[%s813_s22 + $0xc0] sm:$0xff]  ;;  %v183_v34 = vld [vmem:[%s813_s22 + $0x48] sm:$0xff]  ;;  %v184_v36 = vld [vmem:[%s813_s22 + $0x50] sm:$0xff] }
  0x17   : > { %613 = vmatpush3.msra.mxu0 %v216_v5  ;;  %703 = vmatpush3.msra.mxu1 %v216_v5  ;;  %v199_v35 = vld [vmem:[%s813_s22 + $0xc8] sm:$0xff]  ;;  %v200_v37 = vld [vmem:[%s813_s22 + $0xd0] sm:$0xff]  ;;  %v185_v38 = vld [vmem:[%s813_s22 + $0x58] sm:$0xff] }
  0x18   : > { %614 = vmatprep.subr.mxu0 %v215_v6  ;;  %688 = vmatprep.subr.mxu1 %v215_v6  ;;  %v201_v39 = vld [vmem:[%s813_s22 + $0xd8] sm:$0xff]  ;;  %v186_v40 = vld [vmem:[%s813_s22 + $0x60] sm:$0xff]  ;;  %v187_v42 = vld [vmem:[%s813_s22 + $0x68] sm:$0xff] }
  0x19   : > { %615 = vmatpush3.msra.mxu0 %v215_v6  ;;  %704 = vmatpush3.msra.mxu1 %v215_v6  ;;  %v202_v41 = vld [vmem:[%s813_s22 + $0xe0] sm:$0xff]  ;;  %v203_v43 = vld [vmem:[%s813_s22 + $0xe8] sm:$0xff]  ;;  %v188_v44 = vld [vmem:[%s813_s22 + $0x70] sm:$0xff] }
  0x1a   : > { %616 = vmatprep.subr.mxu0 %v214_v7  ;;  %689 = vmatprep.subr.mxu1 %v214_v7  ;;  %v204_v45 = vld [vmem:[%s813_s22 + $0xf0] sm:$0xff]  ;;  %v189_v46 = vld [vmem:[%s813_s22 + $0x78] sm:$0xff]  ;;  %v853_v48 = vld [vmem:[%s931_s2] ss:$0 sm:$0xff] }
  0x1b   : > { %617 = vmatpush3.msra.mxu0 %v214_v7  ;;  %705 = vmatpush3.msra.mxu1 %v214_v7  ;;  %v205_v47 = vld [vmem:[%s813_s22 + $0xf8] sm:$0xff] }
  0x1c   : > { %618 = vmatprep.subr.mxu0 %v213_v8  ;;  %690 = vmatprep.subr.mxu1 %v213_v8 }
  0x1d   : > { %619 = vmatpush3.msra.mxu0 %v213_v8  ;;  %706 = vmatpush3.msra.mxu1 %v213_v8 }
  0x1e   : > { %620 = vmatprep.subr.mxu0 %v212_v9  ;;  %691 = vmatprep.subr.mxu1 %v212_v9 }
  0x1f   : > { %621 = vmatpush3.msra.mxu0 %v212_v9  ;;  %707 = vmatpush3.msra.mxu1 %v212_v9 }
  0x20   : > { %622 = vmatprep.subr.mxu0 %v211_v10  ;;  %692 = vmatprep.subr.mxu1 %v211_v10 }
  0x21   : > { %623 = vmatpush3.msra.mxu0 %v211_v10  ;;  %708 = vmatpush3.msra.mxu1 %v211_v10 }
  0x22   : > { %624 = vmatprep.subr.mxu0 %v210_v11  ;;  %693 = vmatprep.subr.mxu1 %v210_v11 }
  0x23   : > { %625 = vmatpush3.msra.mxu0 %v210_v11  ;;  %709 = vmatpush3.msra.mxu1 %v210_v11 }
  0x24   : > { %626 = vmatprep.subr.mxu0 %v209_v12  ;;  %694 = vmatprep.subr.mxu1 %v209_v12 }
  0x25   : > { %627 = vmatpush3.msra.mxu0 %v209_v12  ;;  %710 = vmatpush3.msra.mxu1 %v209_v12 }
  0x26   : > { %628 = vmatprep.subr.mxu0 %v208_v13  ;;  %695 = vmatprep.subr.mxu1 %v208_v13 }
  0x27   : > { %629 = vmatpush3.msra.mxu0 %v208_v13  ;;  %711 = vmatpush3.msra.mxu1 %v208_v13 }
  0x28   : > { %630 = vmatprep.subr.mxu0 %v207_v14  ;;  %696 = vmatprep.subr.mxu1 %v207_v14 }
  0x29   : > { %631 = vmatpush3.msra.mxu0 %v207_v14  ;;  %712 = vmatpush3.msra.mxu1 %v207_v14 }
  0x2a   : > { %632 = vmatprep.subr.mxu0 %v206_v15  ;;  %697 = vmatprep.subr.mxu1 %v206_v15 }
  0x2b   : > { %633 = vmatpush3.msra.mxu0 %v206_v15  ;;  %713 = vmatpush3.msra.mxu1 %v206_v15 }
  0x2c   : > { %634 = vmatprep.mubr.f32.mxu0 %v174_v16  ;;  %658 = vmatprep.mubr.f32.mxu1 %v190_v17 }
  0x2d   : > { %635 = vmatmul.mubr.f32.vlgmr.msra.gmra.mxu0 %v175_v18  ;;  %659 = vmatmul.mubr.f32.vlgmr.msra.gmra.mxu1 %v191_v19 }
  0x2e   : > { %637 = vmatprep.mubr.f32.mxu0 %v176_v20  ;;  %661 = vmatprep.mubr.f32.mxu1 %v192_v21 }
  0x31   : > { %638 = vmatmul.mubr.f32.gmra.mxu0 %v177_v22  ;;  %662 = vmatmul.mubr.f32.gmra.mxu1 %v193_v23 }
  0x32   : > { %640 = vmatprep.mubr.f32.mxu0 %v178_v24  ;;  %664 = vmatprep.mubr.f32.mxu1 %v194_v25 }
  0x35   : > { %641 = vmatmul.mubr.f32.gmra.mxu0 %v179_v26  ;;  %665 = vmatmul.mubr.f32.gmra.mxu1 %v195_v27 }
  0x36   : > { %643 = vmatprep.mubr.f32.mxu0 %v180_v28  ;;  %667 = vmatprep.mubr.f32.mxu1 %v196_v29 }
  0x39   : > { %644 = vmatmul.mubr.f32.gmra.mxu0 %v181_v30  ;;  %668 = vmatmul.mubr.f32.gmra.mxu1 %v197_v31 }
  0x3a   : > { %646 = vmatprep.mubr.f32.mxu0 %v182_v32  ;;  %670 = vmatprep.mubr.f32.mxu1 %v198_v33 }
  0x3d   : > { %647 = vmatmul.mubr.f32.gmra.mxu0 %v183_v34  ;;  %671 = vmatmul.mubr.f32.gmra.mxu1 %v199_v35 }
  0x3e   : > { %649 = vmatprep.mubr.f32.mxu0 %v184_v36  ;;  %673 = vmatprep.mubr.f32.mxu1 %v200_v37 }
  0x41   : > { %650 = vmatmul.mubr.f32.gmra.mxu0 %v185_v38  ;;  %674 = vmatmul.mubr.f32.gmra.mxu1 %v201_v39 }
  0x42   : > { %652 = vmatprep.mubr.f32.mxu0 %v186_v40  ;;  %676 = vmatprep.mubr.f32.mxu1 %v202_v41 }
  0x45   : > { %653 = vmatmul.mubr.f32.gmra.mxu0 %v187_v42  ;;  %677 = vmatmul.mubr.f32.gmra.mxu1 %v203_v43 }
  0x46   : > { %655 = vmatprep.mubr.f32.mxu0 %v188_v44  ;;  %679 = vmatprep.mubr.f32.mxu1 %v204_v45 }
  0x49   : > { %656 = vmatmul.mubr.f32.gmra.mxu0 %v189_v46  ;;  %680 = vmatmul.mubr.f32.gmra.mxu1 %v205_v47 }
  0xed   : > { %v636_v49 = vpop.f32.mrf.mxu0  ;;  %v660_v50 = vpop.f32.mrf.mxu1 }
  0xee   : > { %v301_v51 = vadd.f32 %v636_v49, %v853_v48  ;;  %v381_v52 = vadd.f32 %v660_v50, %v853_v48 }
  0xef   : > { %v295_v53 = vpop.f32.mrf.mxu0  ;;  %v375_v54 = vpop.f32.mrf.mxu1 }
  0xf0   : > { %455 = vst [vmem:[%s860_s29 + $0x8] sm:$0xff] %v301_v51  ;;  %471 = vst [vmem:[%s860_s29 + $0x88] sm:$0xff] %v381_v52  ;;  %v296_v55 = vadd.f32 %v853_v48, %v295_v53  ;;  %v376_v56 = vadd.f32 %v853_v48, %v375_v54 }
  0xf1   : > { %v639_v57 = vpop.f32.mrf.mxu0  ;;  %v663_v58 = vpop.f32.mrf.mxu1 }
  0xf2   : > { %454 = vst [vmem:[%s860_s29] sm:$0xff] %v296_v55  ;;  %470 = vst [vmem:[%s860_s29 + $0x80] sm:$0xff] %v376_v56  ;;  %v311_v59 = vadd.f32 %v639_v57, %v853_v48  ;;  %v391_v60 = vadd.f32 %v663_v58, %v853_v48 }
  0xf3   : > { %v305_v61 = vpop.f32.mrf.mxu0  ;;  %v385_v62 = vpop.f32.mrf.mxu1 }
  0xf4   : > { %457 = vst [vmem:[%s860_s29 + $0x18] sm:$0xff] %v311_v59  ;;  %473 = vst [vmem:[%s860_s29 + $0x98] sm:$0xff] %v391_v60  ;;  %v306_v63 = vadd.f32 %v853_v48, %v305_v61  ;;  %v386_v0 = vadd.f32 %v853_v48, %v385_v62 }
  0xf5   : > { %v642_v1 = vpop.f32.mrf.mxu0  ;;  %v666_v2 = vpop.f32.mrf.mxu1 }
  0xf6   : > { %456 = vst [vmem:[%s860_s29 + $0x10] sm:$0xff] %v306_v63  ;;  %472 = vst [vmem:[%s860_s29 + $0x90] sm:$0xff] %v386_v0  ;;  %v321_v3 = vadd.f32 %v642_v1, %v853_v48  ;;  %v401_v4 = vadd.f32 %v666_v2, %v853_v48 }
  0xf7   : > { %v315_v5 = vpop.f32.mrf.mxu0  ;;  %v395_v6 = vpop.f32.mrf.mxu1 }
  0xf8   : > { %459 = vst [vmem:[%s860_s29 + $0x28] sm:$0xff] %v321_v3  ;;  %475 = vst [vmem:[%s860_s29 + $0xa8] sm:$0xff] %v401_v4  ;;  %v316_v7 = vadd.f32 %v853_v48, %v315_v5  ;;  %v396_v8 = vadd.f32 %v853_v48, %v395_v6 }
  0xf9   : > { %v645_v9 = vpop.f32.mrf.mxu0  ;;  %v669_v10 = vpop.f32.mrf.mxu1 }
  0xfa   : > { %458 = vst [vmem:[%s860_s29 + $0x20] sm:$0xff] %v316_v7  ;;  %474 = vst [vmem:[%s860_s29 + $0xa0] sm:$0xff] %v396_v8  ;;  %v331_v11 = vadd.f32 %v645_v9, %v853_v48  ;;  %v411_v12 = vadd.f32 %v669_v10, %v853_v48 }
  0xfb   : > { %v325_v13 = vpop.f32.mrf.mxu0  ;;  %v405_v14 = vpop.f32.mrf.mxu1 }
  0xfc   : > { %461 = vst [vmem:[%s860_s29 + $0x38] sm:$0xff] %v331_v11  ;;  %477 = vst [vmem:[%s860_s29 + $0xb8] sm:$0xff] %v411_v12  ;;  %v326_v15 = vadd.f32 %v853_v48, %v325_v13  ;;  %v406_v16 = vadd.f32 %v853_v48, %v405_v14 }
  0xfd   : > { %v648_v17 = vpop.f32.mrf.mxu0  ;;  %v672_v18 = vpop.f32.mrf.mxu1 }
  0xfe   : > { %460 = vst [vmem:[%s860_s29 + $0x30] sm:$0xff] %v326_v15  ;;  %476 = vst [vmem:[%s860_s29 + $0xb0] sm:$0xff] %v406_v16  ;;  %v341_v19 = vadd.f32 %v648_v17, %v853_v48  ;;  %v421_v20 = vadd.f32 %v672_v18, %v853_v48 }
  0xff   : > { %v335_v21 = vpop.f32.mrf.mxu0  ;;  %v415_v22 = vpop.f32.mrf.mxu1 }
 0x100   : > { %463 = vst [vmem:[%s860_s29 + $0x48] sm:$0xff] %v341_v19  ;;  %479 = vst [vmem:[%s860_s29 + $0xc8] sm:$0xff] %v421_v20  ;;  %v336_v23 = vadd.f32 %v853_v48, %v335_v21  ;;  %v416_v24 = vadd.f32 %v853_v48, %v415_v22 }
 0x101   : > { %v651_v25 = vpop.f32.mrf.mxu0  ;;  %v675_v26 = vpop.f32.mrf.mxu1 }
 0x102   : > { %462 = vst [vmem:[%s860_s29 + $0x40] sm:$0xff] %v336_v23  ;;  %478 = vst [vmem:[%s860_s29 + $0xc0] sm:$0xff] %v416_v24  ;;  %v351_v27 = vadd.f32 %v651_v25, %v853_v48  ;;  %v431_v28 = vadd.f32 %v675_v26, %v853_v48 }
 0x103   : > { %v345_v29 = vpop.f32.mrf.mxu0  ;;  %v425_v30 = vpop.f32.mrf.mxu1 }
 0x104   : > { %465 = vst [vmem:[%s860_s29 + $0x58] sm:$0xff] %v351_v27  ;;  %481 = vst [vmem:[%s860_s29 + $0xd8] sm:$0xff] %v431_v28  ;;  %v346_v31 = vadd.f32 %v853_v48, %v345_v29  ;;  %v426_v32 = vadd.f32 %v853_v48, %v425_v30 }
 0x105   : > { %v654_v33 = vpop.f32.mrf.mxu0  ;;  %v678_v34 = vpop.f32.mrf.mxu1 }
 0x106   : > { %464 = vst [vmem:[%s860_s29 + $0x50] sm:$0xff] %v346_v31  ;;  %480 = vst [vmem:[%s860_s29 + $0xd0] sm:$0xff] %v426_v32  ;;  %v361_v35 = vadd.f32 %v654_v33, %v853_v48  ;;  %v441_v36 = vadd.f32 %v678_v34, %v853_v48 }
 0x107   : > { %v355_v37 = vpop.f32.mrf.mxu0  ;;  %v435_v38 = vpop.f32.mrf.mxu1 }
 0x108   : > { %467 = vst [vmem:[%s860_s29 + $0x68] sm:$0xff] %v361_v35  ;;  %483 = vst [vmem:[%s860_s29 + $0xe8] sm:$0xff] %v441_v36  ;;  %v356_v39 = vadd.f32 %v853_v48, %v355_v37  ;;  %v436_v40 = vadd.f32 %v853_v48, %v435_v38 }
 0x109   : > { %v657_v41 = vpop.f32.mrf.mxu0  ;;  %v681_v42 = vpop.f32.mrf.mxu1 }
 0x10a   : > { %466 = vst [vmem:[%s860_s29 + $0x60] sm:$0xff] %v356_v39  ;;  %482 = vst [vmem:[%s860_s29 + $0xe0] sm:$0xff] %v436_v40  ;;  %v371_v43 = vadd.f32 %v657_v41, %v853_v48  ;;  %v451_v44 = vadd.f32 %v681_v42, %v853_v48 }
 0x10b   : > { %v365_v45 = vpop.f32.mrf.mxu0  ;;  %v445_v46 = vpop.f32.mrf.mxu1 }
 0x10c   : > { %469 = vst [vmem:[%s860_s29 + $0x78] sm:$0xff] %v371_v43  ;;  %485 = vst [vmem:[%s860_s29 + $0xf8] sm:$0xff] %v451_v44  ;;  %v366_v47 = vadd.f32 %v853_v48, %v365_v45  ;;  %v446_v49 = vadd.f32 %v853_v48, %v445_v46 }
 0x10e   : > { %468 = vst [vmem:[%s860_s29 + $0x70] sm:$0xff] %v366_v47  ;;  %484 = vst [vmem:[%s860_s29 + $0xf0] sm:$0xff] %v446_v49 }
 0x10f PF: > { %s13_s12 = sadd.s32 1, %s728_s12  }
 0x110   : > { %p10_p4 = scmp.ge.s32.totalorder %s13_s12, 4  }
 0x112   :  { %12 = sbr.rel (!%p10_p4) target bundleno = 1 (0x1), region = 62 }

// kernel: msrb_pallas.39
= control target key start
LH: loop header
LB: loop body
LE: loop exit
PB: predicated region body
PF: predicated region fallthrough
CT: control target
= control target key end

     0   :  { %s506_s1 = inlined_call_operand.vmem [shape: f32[128,128], index: 1, kind: input, shape index: {}]   ;;  %s507_s0 = inlined_call_operand.vmem [shape: f32[128,128], index: 0, kind: input, shape index: {}]   ;;  %s508_s2 = inlined_call_operand.vmem [shape: f32[1,128], index: 2, kind: input, shape index: {}]   ;;  %s509_s3 = inlined_call_operand.vmem [shape: f32[128,128], index: 3, kind: output, shape index: {}]  }
   0x1   :  { %v45_v0 = vld [vmem:[%s506_s1 + $0x78] sm:$0xff]  ;;  %v44_v1 = vld [vmem:[%s506_s1 + $0x70] sm:$0xff]  ;;  %v43_v2 = vld [vmem:[%s506_s1 + $0x68] sm:$0xff] }
   0x2   :  { %251 = vmatprep.subr.mxu0 %v45_v0  ;;  %307 = vmatprep.subr.mxu1 %v45_v0  ;;  %v42_v3 = vld [vmem:[%s506_s1 + $0x60] sm:$0xff]  ;;  %v41_v4 = vld [vmem:[%s506_s1 + $0x58] sm:$0xff]  ;;  %v40_v5 = vld [vmem:[%s506_s1 + $0x50] sm:$0xff] }
   0x3   :  { %252 = vmatpush3.msra.mxu0 %v45_v0  ;;  %323 = vmatpush3.msra.mxu1 %v45_v0  ;;  %v39_v6 = vld [vmem:[%s506_s1 + $0x48] sm:$0xff]  ;;  %v38_v7 = vld [vmem:[%s506_s1 + $0x40] sm:$0xff]  ;;  %v37_v8 = vld [vmem:[%s506_s1 + $0x38] sm:$0xff] }
   0x4   :  { %253 = vmatprep.subr.mxu0 %v44_v1  ;;  %308 = vmatprep.subr.mxu1 %v44_v1  ;;  %v36_v9 = vld [vmem:[%s506_s1 + $0x30] sm:$0xff]  ;;  %v35_v10 = vld [vmem:[%s506_s1 + $0x28] sm:$0xff]  ;;  %v34_v11 = vld [vmem:[%s506_s1 + $0x20] sm:$0xff] }
   0x5   :  { %254 = vmatpush3.msra.mxu0 %v44_v1  ;;  %324 = vmatpush3.msra.mxu1 %v44_v1  ;;  %v33_v12 = vld [vmem:[%s506_s1 + $0x18] sm:$0xff]  ;;  %v32_v13 = vld [vmem:[%s506_s1 + $0x10] sm:$0xff]  ;;  %v31_v14 = vld [vmem:[%s506_s1 + $0x8] sm:$0xff] }
   0x6   :  { %255 = vmatprep.subr.mxu0 %v43_v2  ;;  %309 = vmatprep.subr.mxu1 %v43_v2  ;;  %v30_v15 = vld [vmem:[%s506_s1] sm:$0xff]  ;;  %v15_v18 = vld [vmem:[%s507_s0 + $0x8] sm:$0xff]  ;;  %v16_v20 = vld [vmem:[%s507_s0 + $0x10] sm:$0xff] }
   0x7   :  { %256 = vmatpush3.msra.mxu0 %v43_v2  ;;  %325 = vmatpush3.msra.mxu1 %v43_v2  ;;  %v14_v16 = vld [vmem:[%s507_s0] sm:$0xff]  ;;  %v23_v19 = vld [vmem:[%s507_s0 + $0x48] sm:$0xff]  ;;  %v24_v21 = vld [vmem:[%s507_s0 + $0x50] sm:$0xff] }
   0x8   :  { %257 = vmatprep.subr.mxu0 %v42_v3  ;;  %310 = vmatprep.subr.mxu1 %v42_v3  ;;  %v22_v17 = vld [vmem:[%s507_s0 + $0x40] sm:$0xff]  ;;  %v17_v22 = vld [vmem:[%s507_s0 + $0x18] sm:$0xff]  ;;  %v19_v26 = vld [vmem:[%s507_s0 + $0x28] sm:$0xff] }
   0x9   :  { %258 = vmatpush3.msra.mxu0 %v42_v3  ;;  %326 = vmatpush3.msra.mxu1 %v42_v3  ;;  %v25_v23 = vld [vmem:[%s507_s0 + $0x58] sm:$0xff]  ;;  %v18_v24 = vld [vmem:[%s507_s0 + $0x20] sm:$0xff]  ;;  %v27_v27 = vld [vmem:[%s507_s0 + $0x68] sm:$0xff] }
   0xa   :  { %259 = vmatprep.subr.mxu0 %v41_v4  ;;  %311 = vmatprep.subr.mxu1 %v41_v4  ;;  %v26_v25 = vld [vmem:[%s507_s0 + $0x60] sm:$0xff]  ;;  %v20_v28 = vld [vmem:[%s507_s0 + $0x30] sm:$0xff]  ;;  %v21_v30 = vld [vmem:[%s507_s0 + $0x38] sm:$0xff] }
   0xb   :  { %260 = vmatpush3.msra.mxu0 %v41_v4  ;;  %327 = vmatpush3.msra.mxu1 %v41_v4  ;;  %v28_v29 = vld [vmem:[%s507_s0 + $0x70] sm:$0xff]  ;;  %v29_v31 = vld [vmem:[%s507_s0 + $0x78] sm:$0xff]  ;;  %v218_v32 = vld [vmem:[%s508_s2] ss:$0 sm:$0xff] }
   0xc   :  { %261 = vmatprep.subr.mxu0 %v40_v5  ;;  %312 = vmatprep.subr.mxu1 %v40_v5 }
   0xd   :  { %262 = vmatpush3.msra.mxu0 %v40_v5  ;;  %328 = vmatpush3.msra.mxu1 %v40_v5 }
   0xe   :  { %263 = vmatprep.subr.mxu0 %v39_v6  ;;  %313 = vmatprep.subr.mxu1 %v39_v6 }
   0xf   :  { %264 = vmatpush3.msra.mxu0 %v39_v6  ;;  %329 = vmatpush3.msra.mxu1 %v39_v6 }
  0x10   :  { %265 = vmatprep.subr.mxu0 %v38_v7  ;;  %314 = vmatprep.subr.mxu1 %v38_v7 }
  0x11   :  { %266 = vmatpush3.msra.mxu0 %v38_v7  ;;  %330 = vmatpush3.msra.mxu1 %v38_v7 }
  0x12   :  { %267 = vmatprep.subr.mxu0 %v37_v8  ;;  %315 = vmatprep.subr.mxu1 %v37_v8 }
  0x13   :  { %268 = vmatpush3.msra.mxu0 %v37_v8  ;;  %331 = vmatpush3.msra.mxu1 %v37_v8 }
  0x14   :  { %269 = vmatprep.subr.mxu0 %v36_v9  ;;  %316 = vmatprep.subr.mxu1 %v36_v9 }
  0x15   :  { %270 = vmatpush3.msra.mxu0 %v36_v9  ;;  %332 = vmatpush3.msra.mxu1 %v36_v9 }
  0x16   :  { %271 = vmatprep.subr.mxu0 %v35_v10  ;;  %317 = vmatprep.subr.mxu1 %v35_v10 }
  0x17   :  { %272 = vmatpush3.msra.mxu0 %v35_v10  ;;  %333 = vmatpush3.msra.mxu1 %v35_v10 }
  0x18   :  { %273 = vmatprep.subr.mxu0 %v34_v11  ;;  %318 = vmatprep.subr.mxu1 %v34_v11 }
  0x19   :  { %274 = vmatpush3.msra.mxu0 %v34_v11  ;;  %334 = vmatpush3.msra.mxu1 %v34_v11 }
  0x1a   :  { %275 = vmatprep.subr.mxu0 %v33_v12  ;;  %319 = vmatprep.subr.mxu1 %v33_v12 }
  0x1b   :  { %276 = vmatpush3.msra.mxu0 %v33_v12  ;;  %335 = vmatpush3.msra.mxu1 %v33_v12 }
  0x1c   :  { %277 = vmatprep.subr.mxu0 %v32_v13  ;;  %320 = vmatprep.subr.mxu1 %v32_v13 }
  0x1d   :  { %278 = vmatpush3.msra.mxu0 %v32_v13  ;;  %336 = vmatpush3.msra.mxu1 %v32_v13 }
  0x1e   :  { %279 = vmatprep.subr.mxu0 %v31_v14  ;;  %321 = vmatprep.subr.mxu1 %v31_v14 }
  0x1f   :  { %280 = vmatpush3.msra.mxu0 %v31_v14  ;;  %337 = vmatpush3.msra.mxu1 %v31_v14 }
  0x20   :  { %281 = vmatprep.subr.mxu0 %v30_v15  ;;  %322 = vmatprep.subr.mxu1 %v30_v15 }
  0x21   :  { %282 = vmatpush3.msra.mxu0 %v30_v15  ;;  %338 = vmatpush3.msra.mxu1 %v30_v15 }
  0x22   :  { %283 = vmatprep.mubr.f32.mxu0 %v14_v16  ;;  %295 = vmatprep.mubr.f32.mxu1 %v22_v17 }
  0x23   :  { %284 = vmatmul.mubr.f32.vlgmr.msra.gmra.mxu0 %v15_v18  ;;  %296 = vmatmul.mubr.f32.vlgmr.msra.gmra.mxu1 %v23_v19 }
  0x24   :  { %286 = vmatprep.mubr.f32.mxu0 %v16_v20  ;;  %298 = vmatprep.mubr.f32.mxu1 %v24_v21 }
  0x27   :  { %287 = vmatmul.mubr.f32.gmra.mxu0 %v17_v22  ;;  %299 = vmatmul.mubr.f32.gmra.mxu1 %v25_v23 }
  0x28   :  { %289 = vmatprep.mubr.f32.mxu0 %v18_v24  ;;  %301 = vmatprep.mubr.f32.mxu1 %v26_v25 }
  0x2b   :  { %290 = vmatmul.mubr.f32.gmra.mxu0 %v19_v26  ;;  %302 = vmatmul.mubr.f32.gmra.mxu1 %v27_v27 }
  0x2c   :  { %292 = vmatprep.mubr.f32.mxu0 %v20_v28  ;;  %304 = vmatprep.mubr.f32.mxu1 %v28_v29 }
  0x2f   :  { %293 = vmatmul.mubr.f32.gmra.mxu0 %v21_v30  ;;  %305 = vmatmul.mubr.f32.gmra.mxu1 %v29_v31 }
  0xe3   :  { %v285_v33 = vpop.f32.mrf.mxu0  ;;  %v297_v34 = vpop.f32.mrf.mxu1 }
  0xe4   :  { %v125_v35 = vadd.f32 %v285_v33, %v218_v32  ;;  %v165_v36 = vadd.f32 %v297_v34, %v218_v32 }
  0xe5   :  { %v119_v37 = vpop.f32.mrf.mxu0  ;;  %v159_v38 = vpop.f32.mrf.mxu1 }
  0xe6   :  { %199 = vst [vmem:[%s509_s3 + $0x8] sm:$0xff] %v125_v35  ;;  %207 = vst [vmem:[%s509_s3 + $0x48] sm:$0xff] %v165_v36  ;;  %v120_v39 = vadd.f32 %v218_v32, %v119_v37  ;;  %v160_v40 = vadd.f32 %v218_v32, %v159_v38 }
  0xe7   :  { %v288_v41 = vpop.f32.mrf.mxu0  ;;  %v300_v42 = vpop.f32.mrf.mxu1 }
  0xe8   :  { %198 = vst [vmem:[%s509_s3] sm:$0xff] %v120_v39  ;;  %206 = vst [vmem:[%s509_s3 + $0x40] sm:$0xff] %v160_v40  ;;  %v135_v43 = vadd.f32 %v288_v41, %v218_v32  ;;  %v175_v44 = vadd.f32 %v300_v42, %v218_v32 }
  0xe9   :  { %v129_v45 = vpop.f32.mrf.mxu0  ;;  %v169_v46 = vpop.f32.mrf.mxu1 }
  0xea   :  { %201 = vst [vmem:[%s509_s3 + $0x18] sm:$0xff] %v135_v43  ;;  %209 = vst [vmem:[%s509_s3 + $0x58] sm:$0xff] %v175_v44  ;;  %v130_v47 = vadd.f32 %v218_v32, %v129_v45  ;;  %v170_v48 = vadd.f32 %v218_v32, %v169_v46 }
  0xeb   :  { %v291_v49 = vpop.f32.mrf.mxu0  ;;  %v303_v50 = vpop.f32.mrf.mxu1 }
  0xec   :  { %200 = vst [vmem:[%s509_s3 + $0x10] sm:$0xff] %v130_v47  ;;  %208 = vst [vmem:[%s509_s3 + $0x50] sm:$0xff] %v170_v48  ;;  %v145_v51 = vadd.f32 %v291_v49, %v218_v32  ;;  %v185_v52 = vadd.f32 %v303_v50, %v218_v32 }
  0xed   :  { %v139_v53 = vpop.f32.mrf.mxu0  ;;  %v179_v54 = vpop.f32.mrf.mxu1 }
  0xee   :  { %203 = vst [vmem:[%s509_s3 + $0x28] sm:$0xff] %v145_v51  ;;  %211 = vst [vmem:[%s509_s3 + $0x68] sm:$0xff] %v185_v52  ;;  %v140_v55 = vadd.f32 %v218_v32, %v139_v53  ;;  %v180_v56 = vadd.f32 %v218_v32, %v179_v54 }
  0xef   :  { %v294_v57 = vpop.f32.mrf.mxu0  ;;  %v306_v58 = vpop.f32.mrf.mxu1 }
  0xf0   :  { %202 = vst [vmem:[%s509_s3 + $0x20] sm:$0xff] %v140_v55  ;;  %210 = vst [vmem:[%s509_s3 + $0x60] sm:$0xff] %v180_v56  ;;  %v155_v59 = vadd.f32 %v294_v57, %v218_v32  ;;  %v195_v60 = vadd.f32 %v306_v58, %v218_v32 }
  0xf1   :  { %v149_v61 = vpop.f32.mrf.mxu0  ;;  %v189_v62 = vpop.f32.mrf.mxu1 }
  0xf2   :  { %205 = vst [vmem:[%s509_s3 + $0x38] sm:$0xff] %v155_v59  ;;  %213 = vst [vmem:[%s509_s3 + $0x78] sm:$0xff] %v195_v60  ;;  %v150_v63 = vadd.f32 %v218_v32, %v149_v61  ;;  %v190_v0 = vadd.f32 %v218_v32, %v189_v62 }
  0xf4   :  { %204 = vst [vmem:[%s509_s3 + $0x30] sm:$0xff] %v150_v63  ;;  %212 = vst [vmem:[%s509_s3 + $0x70] sm:$0xff] %v190_v0 }

// kernel: msrb_pallas.41
= control target key start
LH: loop header
LB: loop body
LE: loop exit
PB: predicated region body
PF: predicated region fallthrough
CT: control target
= control target key end

     0   :  { %s644_s1 = inlined_call_operand.vmem [shape: f32[256,128], index: 1, kind: input, shape index: {}]   ;;  %s645_s0 = inlined_call_operand.vmem [shape: f32[128,256], index: 0, kind: input, shape index: {}]   ;;  %s646_s2 = inlined_call_operand.vmem [shape: f32[1,128], index: 2, kind: input, shape index: {}]   ;;  %s647_s3 = inlined_call_operand.vmem [shape: f32[128,128], index: 3, kind: output, shape index: {}]  }
   0x1   :  { %v77_v0 = vld [vmem:[%s644_s1 + $0xf8] sm:$0xff]  ;;  %v76_v2 = vld [vmem:[%s644_s1 + $0xf0] sm:$0xff]  ;;  %v75_v4 = vld [vmem:[%s644_s1 + $0xe8] sm:$0xff] }
   0x2   :  { %v61_v1 = vld [vmem:[%s644_s1 + $0x78] sm:$0xff]  ;;  %251 = vmatprep.subr.mxu0 %v77_v0  ;;  %331 = vmatprep.subr.mxu1 %v77_v0  ;;  %v60_v3 = vld [vmem:[%s644_s1 + $0x70] sm:$0xff]  ;;  %v59_v5 = vld [vmem:[%s644_s1 + $0x68] sm:$0xff] }
   0x3   :  { %252 = vmatpush3.msra.mxu0 %v61_v1  ;;  %347 = vmatpush3.msra.mxu1 %v61_v1  ;;  %v74_v6 = vld [vmem:[%s644_s1 + $0xe0] sm:$0xff]  ;;  %v73_v8 = vld [vmem:[%s644_s1 + $0xd8] sm:$0xff]  ;;  %v72_v10 = vld [vmem:[%s644_s1 + $0xd0] sm:$0xff] }
   0x4   :  { %253 = vmatprep.subr.mxu0 %v76_v2  ;;  %332 = vmatprep.subr.mxu1 %v76_v2  ;;  %v58_v7 = vld [vmem:[%s644_s1 + $0x60] sm:$0xff]  ;;  %v57_v9 = vld [vmem:[%s644_s1 + $0x58] sm:$0xff]  ;;  %v56_v11 = vld [vmem:[%s644_s1 + $0x50] sm:$0xff] }
   0x5   :  { %254 = vmatpush3.msra.mxu0 %v60_v3  ;;  %348 = vmatpush3.msra.mxu1 %v60_v3  ;;  %v71_v12 = vld [vmem:[%s644_s1 + $0xc8] sm:$0xff]  ;;  %v70_v14 = vld [vmem:[%s644_s1 + $0xc0] sm:$0xff]  ;;  %v69_v16 = vld [vmem:[%s644_s1 + $0xb8] sm:$0xff] }
   0x6   :  { %255 = vmatprep.subr.mxu0 %v75_v4  ;;  %333 = vmatprep.subr.mxu1 %v75_v4  ;;  %v55_v13 = vld [vmem:[%s644_s1 + $0x48] sm:$0xff]  ;;  %v54_v15 = vld [vmem:[%s644_s1 + $0x40] sm:$0xff]  ;;  %v53_v17 = vld [vmem:[%s644_s1 + $0x38] sm:$0xff] }
   0x7   :  { %256 = vmatpush3.msra.mxu0 %v59_v5  ;;  %349 = vmatpush3.msra.mxu1 %v59_v5  ;;  %v68_v18 = vld [vmem:[%s644_s1 + $0xb0] sm:$0xff]  ;;  %v67_v20 = vld [vmem:[%s644_s1 + $0xa8] sm:$0xff]  ;;  %v66_v22 = vld [vmem:[%s644_s1 + $0xa0] sm:$0xff] }
   0x8   :  { %257 = vmatprep.subr.mxu0 %v74_v6  ;;  %334 = vmatprep.subr.mxu1 %v74_v6  ;;  %v52_v19 = vld [vmem:[%s644_s1 + $0x30] sm:$0xff]  ;;  %v51_v21 = vld [vmem:[%s644_s1 + $0x28] sm:$0xff]  ;;  %v50_v23 = vld [vmem:[%s644_s1 + $0x20] sm:$0xff] }
   0x9   :  { %258 = vmatpush3.msra.mxu0 %v58_v7  ;;  %350 = vmatpush3.msra.mxu1 %v58_v7  ;;  %v65_v24 = vld [vmem:[%s644_s1 + $0x98] sm:$0xff]  ;;  %v64_v26 = vld [vmem:[%s644_s1 + $0x90] sm:$0xff]  ;;  %v63_v28 = vld [vmem:[%s644_s1 + $0x88] sm:$0xff] }
   0xa   :  { %259 = vmatprep.subr.mxu0 %v73_v8  ;;  %335 = vmatprep.subr.mxu1 %v73_v8  ;;  %v49_v25 = vld [vmem:[%s644_s1 + $0x18] sm:$0xff]  ;;  %v48_v27 = vld [vmem:[%s644_s1 + $0x10] sm:$0xff]  ;;  %v47_v29 = vld [vmem:[%s644_s1 + $0x8] sm:$0xff] }
   0xb   :  { %260 = vmatpush3.msra.mxu0 %v57_v9  ;;  %351 = vmatpush3.msra.mxu1 %v57_v9  ;;  %v62_v30 = vld [vmem:[%s644_s1 + $0x80] sm:$0xff]  ;;  %v15_v32 = vld [vmem:[%s645_s0 + $0x8] sm:$0xff]  ;;  %v17_v36 = vld [vmem:[%s645_s0 + $0x18] sm:$0xff] }
   0xc   :  { %261 = vmatprep.subr.mxu0 %v72_v10  ;;  %336 = vmatprep.subr.mxu1 %v72_v10  ;;  %v46_v31 = vld [vmem:[%s644_s1] sm:$0xff]  ;;  %v31_v33 = vld [vmem:[%s645_s0 + $0x88] sm:$0xff]  ;;  %v33_v37 = vld [vmem:[%s645_s0 + $0x98] sm:$0xff] }
   0xd   :  { %262 = vmatpush3.msra.mxu0 %v56_v11  ;;  %352 = vmatpush3.msra.mxu1 %v56_v11  ;;  %v14_v34 = vld [vmem:[%s645_s0] sm:$0xff]  ;;  %v16_v38 = vld [vmem:[%s645_s0 + $0x10] sm:$0xff]  ;;  %v19_v40 = vld [vmem:[%s645_s0 + $0x28] sm:$0xff] }
   0xe   :  { %263 = vmatprep.subr.mxu0 %v71_v12  ;;  %337 = vmatprep.subr.mxu1 %v71_v12  ;;  %v30_v35 = vld [vmem:[%s645_s0 + $0x80] sm:$0xff]  ;;  %v32_v39 = vld [vmem:[%s645_s0 + $0x90] sm:$0xff]  ;;  %v35_v41 = vld [vmem:[%s645_s0 + $0xa8] sm:$0xff] }
   0xf   :  { %264 = vmatpush3.msra.mxu0 %v55_v13  ;;  %353 = vmatpush3.msra.mxu1 %v55_v13  ;;  %v18_v42 = vld [vmem:[%s645_s0 + $0x20] sm:$0xff]  ;;  %v21_v44 = vld [vmem:[%s645_s0 + $0x38] sm:$0xff]  ;;  %v20_v46 = vld [vmem:[%s645_s0 + $0x30] sm:$0xff] }
  0x10   :  { %265 = vmatprep.subr.mxu0 %v70_v14  ;;  %338 = vmatprep.subr.mxu1 %v70_v14  ;;  %v34_v43 = vld [vmem:[%s645_s0 + $0xa0] sm:$0xff]  ;;  %v37_v45 = vld [vmem:[%s645_s0 + $0xb8] sm:$0xff]  ;;  %v36_v47 = vld [vmem:[%s645_s0 + $0xb0] sm:$0xff] }
  0x11   :  { %266 = vmatpush3.msra.mxu0 %v54_v15  ;;  %354 = vmatpush3.msra.mxu1 %v54_v15  ;;  %v23_v48 = vld [vmem:[%s645_s0 + $0x48] sm:$0xff]  ;;  %v22_v50 = vld [vmem:[%s645_s0 + $0x40] sm:$0xff]  ;;  %v25_v52 = vld [vmem:[%s645_s0 + $0x58] sm:$0xff] }
  0x12   :  { %267 = vmatprep.subr.mxu0 %v69_v16  ;;  %339 = vmatprep.subr.mxu1 %v69_v16  ;;  %v39_v49 = vld [vmem:[%s645_s0 + $0xc8] sm:$0xff]  ;;  %v38_v51 = vld [vmem:[%s645_s0 + $0xc0] sm:$0xff]  ;;  %v41_v53 = vld [vmem:[%s645_s0 + $0xd8] sm:$0xff] }
  0x13   :  { %268 = vmatpush3.msra.mxu0 %v53_v17  ;;  %355 = vmatpush3.msra.mxu1 %v53_v17  ;;  %v24_v54 = vld [vmem:[%s645_s0 + $0x50] sm:$0xff]  ;;  %v27_v56 = vld [vmem:[%s645_s0 + $0x68] sm:$0xff]  ;;  %v26_v58 = vld [vmem:[%s645_s0 + $0x60] sm:$0xff] }
  0x14   :  { %269 = vmatprep.subr.mxu0 %v68_v18  ;;  %340 = vmatprep.subr.mxu1 %v68_v18  ;;  %v40_v55 = vld [vmem:[%s645_s0 + $0xd0] sm:$0xff]  ;;  %v43_v57 = vld [vmem:[%s645_s0 + $0xe8] sm:$0xff]  ;;  %v42_v59 = vld [vmem:[%s645_s0 + $0xe0] sm:$0xff] }
  0x15   :  { %270 = vmatpush3.msra.mxu0 %v52_v19  ;;  %356 = vmatpush3.msra.mxu1 %v52_v19  ;;  %v29_v60 = vld [vmem:[%s645_s0 + $0x78] sm:$0xff]  ;;  %v28_v62 = vld [vmem:[%s645_s0 + $0x70] sm:$0xff]  ;;  %v578_v2 = vld [vmem:[%s646_s2] ss:$0 sm:$0xff] }
  0x16   :  { %271 = vmatprep.subr.mxu0 %v67_v20  ;;  %341 = vmatprep.subr.mxu1 %v67_v20  ;;  %v45_v61 = vld [vmem:[%s645_s0 + $0xf8] sm:$0xff]  ;;  %v44_v63 = vld [vmem:[%s645_s0 + $0xf0] sm:$0xff] }
  0x17   :  { %272 = vmatpush3.msra.mxu0 %v51_v21  ;;  %357 = vmatpush3.msra.mxu1 %v51_v21 }
  0x18   :  { %273 = vmatprep.subr.mxu0 %v66_v22  ;;  %342 = vmatprep.subr.mxu1 %v66_v22 }
  0x19   :  { %274 = vmatpush3.msra.mxu0 %v50_v23  ;;  %358 = vmatpush3.msra.mxu1 %v50_v23 }
  0x1a   :  { %275 = vmatprep.subr.mxu0 %v65_v24  ;;  %343 = vmatprep.subr.mxu1 %v65_v24 }
  0x1b   :  { %276 = vmatpush3.msra.mxu0 %v49_v25  ;;  %359 = vmatpush3.msra.mxu1 %v49_v25 }
  0x1c   :  { %277 = vmatprep.subr.mxu0 %v64_v26  ;;  %344 = vmatprep.subr.mxu1 %v64_v26 }
  0x1d   :  { %278 = vmatpush3.msra.mxu0 %v48_v27  ;;  %360 = vmatpush3.msra.mxu1 %v48_v27 }
  0x1e   :  { %279 = vmatprep.subr.mxu0 %v63_v28  ;;  %345 = vmatprep.subr.mxu1 %v63_v28 }
  0x1f   :  { %280 = vmatpush3.msra.mxu0 %v47_v29  ;;  %361 = vmatpush3.msra.mxu1 %v47_v29 }
  0x20   :  { %281 = vmatprep.subr.mxu0 %v62_v30  ;;  %346 = vmatprep.subr.mxu1 %v62_v30 }
  0x21   :  { %282 = vmatpush3.msra.mxu0 %v46_v31  ;;  %362 = vmatpush3.msra.mxu1 %v46_v31 }
  0x22   :  { %149 = vmatprep.mubr.f32.mxu0 %v15_v32  ;;  %189 = vmatprep.mubr.f32.mxu1 %v31_v33 }
  0x23   :  { %150 = vmatmul.mubr.f32.vlgmr.msra.gmra.mxu0 %v14_v34  ;;  %190 = vmatmul.mubr.f32.vlgmr.msra.gmra.mxu1 %v30_v35 }
  0x24   :  { %154 = vmatprep.mubr.f32.mxu0 %v17_v36  ;;  %194 = vmatprep.mubr.f32.mxu1 %v33_v37 }
  0x27   :  { %155 = vmatmul.mubr.f32.gmra.mxu0 %v16_v38  ;;  %195 = vmatmul.mubr.f32.gmra.mxu1 %v32_v39 }
  0x28   :  { %159 = vmatprep.mubr.f32.mxu0 %v19_v40  ;;  %199 = vmatprep.mubr.f32.mxu1 %v35_v41 }
  0x2b   :  { %160 = vmatmul.mubr.f32.gmra.mxu0 %v18_v42  ;;  %200 = vmatmul.mubr.f32.gmra.mxu1 %v34_v43 }
  0x2c   :  { %164 = vmatprep.mubr.f32.mxu0 %v21_v44  ;;  %204 = vmatprep.mubr.f32.mxu1 %v37_v45 }
  0x2f   :  { %165 = vmatmul.mubr.f32.gmra.mxu0 %v20_v46  ;;  %205 = vmatmul.mubr.f32.gmra.mxu1 %v36_v47 }
  0x30   :  { %169 = vmatprep.mubr.f32.mxu0 %v23_v48  ;;  %209 = vmatprep.mubr.f32.mxu1 %v39_v49 }
  0x33   :  { %170 = vmatmul.mubr.f32.gmra.mxu0 %v22_v50  ;;  %210 = vmatmul.mubr.f32.gmra.mxu1 %v38_v51 }
  0x34   :  { %174 = vmatprep.mubr.f32.mxu0 %v25_v52  ;;  %214 = vmatprep.mubr.f32.mxu1 %v41_v53 }
  0x37   :  { %175 = vmatmul.mubr.f32.gmra.mxu0 %v24_v54  ;;  %215 = vmatmul.mubr.f32.gmra.mxu1 %v40_v55 }
  0x38   :  { %179 = vmatprep.mubr.f32.mxu0 %v27_v56  ;;  %219 = vmatprep.mubr.f32.mxu1 %v43_v57 }
  0x3b   :  { %180 = vmatmul.mubr.f32.gmra.mxu0 %v26_v58  ;;  %220 = vmatmul.mubr.f32.gmra.mxu1 %v42_v59 }
  0x3c   :  { %184 = vmatprep.mubr.f32.mxu0 %v29_v60  ;;  %224 = vmatprep.mubr.f32.mxu1 %v45_v61 }
  0x3f   :  { %185 = vmatmul.mubr.f32.gmra.mxu0 %v28_v62  ;;  %225 = vmatmul.mubr.f32.gmra.mxu1 %v44_v63 }
  0xe3   :  { %v283_v0 = vpop.f32.mrf.mxu0  ;;  %v307_v1 = vpop.f32.mrf.mxu1 }
  0xe5   :  { %v284_v3 = vpop.f32.mrf.mxu0  ;;  %v308_v4 = vpop.f32.mrf.mxu1 }
  0xe6   :  { %v285_v5 = vadd.f32 %v284_v3, %v283_v0  ;;  %v309_v6 = vadd.f32 %v308_v4, %v307_v1 }
  0xe7   :  { %v286_v7 = vpop.f32.mrf.mxu0  ;;  %v310_v8 = vpop.f32.mrf.mxu1 }
  0xe8   :  { %v152_v9 = vadd.f32 %v285_v5, %v578_v2  ;;  %v192_v10 = vadd.f32 %v309_v6, %v578_v2 }
  0xe9   :  { %v287_v11 = vpop.f32.mrf.mxu0  ;;  %v311_v12 = vpop.f32.mrf.mxu1 }
  0xea   :  { %230 = vst [vmem:[%s647_s3] sm:$0xff] %v152_v9  ;;  %238 = vst [vmem:[%s647_s3 + $0x40] sm:$0xff] %v192_v10  ;;  %v288_v13 = vadd.f32 %v287_v11, %v286_v7  ;;  %v312_v14 = vadd.f32 %v311_v12, %v310_v8 }
  0xeb   :  { %v289_v15 = vpop.f32.mrf.mxu0  ;;  %v313_v16 = vpop.f32.mrf.mxu1 }
  0xec   :  { %v157_v17 = vadd.f32 %v288_v13, %v578_v2  ;;  %v197_v18 = vadd.f32 %v312_v14, %v578_v2 }
  0xed   :  { %v290_v19 = vpop.f32.mrf.mxu0  ;;  %v314_v20 = vpop.f32.mrf.mxu1 }
  0xee   :  { %231 = vst [vmem:[%s647_s3 + $0x8] sm:$0xff] %v157_v17  ;;  %239 = vst [vmem:[%s647_s3 + $0x48] sm:$0xff] %v197_v18  ;;  %v291_v21 = vadd.f32 %v290_v19, %v289_v15  ;;  %v315_v22 = vadd.f32 %v314_v20, %v313_v16 }
  0xef   :  { %v292_v23 = vpop.f32.mrf.mxu0  ;;  %v316_v24 = vpop.f32.mrf.mxu1 }
  0xf0   :  { %v162_v25 = vadd.f32 %v291_v21, %v578_v2  ;;  %v202_v26 = vadd.f32 %v315_v22, %v578_v2 }
  0xf1   :  { %v293_v27 = vpop.f32.mrf.mxu0  ;;  %v317_v28 = vpop.f32.mrf.mxu1 }
  0xf2   :  { %232 = vst [vmem:[%s647_s3 + $0x10] sm:$0xff] %v162_v25  ;;  %240 = vst [vmem:[%s647_s3 + $0x50] sm:$0xff] %v202_v26  ;;  %v294_v29 = vadd.f32 %v293_v27, %v292_v23  ;;  %v318_v30 = vadd.f32 %v317_v28, %v316_v24 }
  0xf3   :  { %v295_v31 = vpop.f32.mrf.mxu0  ;;  %v319_v32 = vpop.f32.mrf.mxu1 }
  0xf4   :  { %v167_v33 = vadd.f32 %v294_v29, %v578_v2  ;;  %v207_v34 = vadd.f32 %v318_v30, %v578_v2 }
  0xf5   :  { %v296_v35 = vpop.f32.mrf.mxu0  ;;  %v320_v36 = vpop.f32.mrf.mxu1 }
  0xf6   :  { %233 = vst [vmem:[%s647_s3 + $0x18] sm:$0xff] %v167_v33  ;;  %241 = vst [vmem:[%s647_s3 + $0x58] sm:$0xff] %v207_v34  ;;  %v297_v37 = vadd.f32 %v296_v35, %v295_v31  ;;  %v321_v38 = vadd.f32 %v320_v36, %v319_v32 }
  0xf7   :  { %v298_v39 = vpop.f32.mrf.mxu0  ;;  %v322_v40 = vpop.f32.mrf.mxu1 }
  0xf8   :  { %v172_v41 = vadd.f32 %v297_v37, %v578_v2  ;;  %v212_v42 = vadd.f32 %v321_v38, %v578_v2 }
  0xf9   :  { %v299_v43 = vpop.f32.mrf.mxu0  ;;  %v323_v44 = vpop.f32.mrf.mxu1 }
  0xfa   :  { %234 = vst [vmem:[%s647_s3 + $0x20] sm:$0xff] %v172_v41  ;;  %242 = vst [vmem:[%s647_s3 + $0x60] sm:$0xff] %v212_v42  ;;  %v300_v45 = vadd.f32 %v299_v43, %v298_v39  ;;  %v324_v46 = vadd.f32 %v323_v44, %v322_v40 }
  0xfb   :  { %v301_v47 = vpop.f32.mrf.mxu0  ;;  %v325_v48 = vpop.f32.mrf.mxu1 }
  0xfc   :  { %v177_v49 = vadd.f32 %v300_v45, %v578_v2  ;;  %v217_v50 = vadd.f32 %v324_v46, %v578_v2 }
  0xfd   :  { %v302_v51 = vpop.f32.mrf.mxu0  ;;  %v326_v52 = vpop.f32.mrf.mxu1 }
  0xfe   :  { %235 = vst [vmem:[%s647_s3 + $0x28] sm:$0xff] %v177_v49  ;;  %243 = vst [vmem:[%s647_s3 + $0x68] sm:$0xff] %v217_v50  ;;  %v303_v53 = vadd.f32 %v302_v51, %v301_v47  ;;  %v327_v54 = vadd.f32 %v326_v52, %v325_v48 }
  0xff   :  { %v304_v55 = vpop.f32.mrf.mxu0  ;;  %v328_v56 = vpop.f32.mrf.mxu1 }
 0x100   :  { %v182_v57 = vadd.f32 %v303_v53, %v578_v2  ;;  %v222_v58 = vadd.f32 %v327_v54, %v578_v2 }
 0x101   :  { %v305_v59 = vpop.f32.mrf.mxu0  ;;  %v329_v60 = vpop.f32.mrf.mxu1 }
 0x102   :  { %236 = vst [vmem:[%s647_s3 + $0x30] sm:$0xff] %v182_v57  ;;  %244 = vst [vmem:[%s647_s3 + $0x70] sm:$0xff] %v222_v58  ;;  %v306_v61 = vadd.f32 %v305_v59, %v304_v55  ;;  %v330_v62 = vadd.f32 %v329_v60, %v328_v56 }
 0x104   :  { %v187_v63 = vadd.f32 %v306_v61, %v578_v2  ;;  %v227_v0 = vadd.f32 %v330_v62, %v578_v2 }
 0x106   :  { %237 = vst [vmem:[%s647_s3 + $0x38] sm:$0xff] %v187_v63  ;;  %245 = vst [vmem:[%s647_s3 + $0x78] sm:$0xff] %v227_v0 }

// kernel: msrb_pallas.46
= control target key start
LH: loop header
LB: loop body
LE: loop exit
PB: predicated region body
PF: predicated region fallthrough
CT: control target
= control target key end

     0   :  { %s709_s12 = smov 0   ;;  %s1029_s0 = inlined_call_operand.vmem [shape: f32[512,256], index: 0, kind: input, shape index: {}]   ;;  %s1030_s1 = inlined_call_operand.vmem [shape: f32[256,128], index: 1, kind: input, shape index: {}]   ;;  %s1031_s2 = inlined_call_operand.vmem [shape: f32[1,128], index: 2, kind: input, shape index: {}]   ;;  %s1032_s3 = inlined_call_operand.vmem [shape: f32[512,128], index: 3, kind: output, shape index: {}]  }
   0x1 LB: > { %s593_s13 = sadd.s32 4294967295, %s686_s12   ;;  %p597_p0 = scmp.ge.s32.totalorder %s686_s12, 1  ;;  %s686_s12 = sphi %s709_s12, %s13_s12  }
   0x2   : > { %p139_p1 = scmp.lt.s32.totalorder %s686_s12, 3 }
   0x4   : > { %p140_p2 = pnand %p597_p0, %p139_p1 }
   0x5   : > { %s598_s10 = sshll.u32 (!%p140_p2), %s593_s13, 5 }
   0x6   : > { %143 = sbr.rel (%p140_p2) target bundleno = 333 (0x14d), region = 32  ;;  %p165_p3 = scmp.lt.s32.totalorder (!%p140_p2), %s598_s10, 63 }
   0xb   : > { %v256_v0 = vld [vmem:[%s1030_s1 + $0x78] sm:$0xff]  ;;  %v688_v1 = vmov 0.0   ;;  %v255_v2 = vld [vmem:[%s1030_s1 + $0x70] sm:$0xff]  ;;  %v254_v3 = vld [vmem:[%s1030_s1 + $0x68] sm:$0xff]  ;;  %s1034_s10 = smov (!%p165_p3, %s598_s10), 63 }
   0xc   : > { %280 = vmatprep.subr.mxu0 %v688_v1  ;;  %607 = vmatprep.subr.mxu1 %v688_v1  ;;  %v253_v4 = vld [vmem:[%s1030_s1 + $0x60] sm:$0xff]  ;;  %v252_v5 = vld [vmem:[%s1030_s1 + $0x58] sm:$0xff]  ;;  %v251_v6 = vld [vmem:[%s1030_s1 + $0x50] sm:$0xff]  ;;  %s606_s22 = sshll.u32 %s1034_s10, 4  ;;  %s602_s5 = sshll.u32 %s1034_s10, 3 }
   0xd   : > { %281 = vmatpush1.msra.mxu0 %v256_v0  ;;  %639 = vmatpush1.msra.mxu1 %v256_v0  ;;  %v250_v7 = vld [vmem:[%s1030_s1 + $0x48] sm:$0xff]  ;;  %v249_v8 = vld [vmem:[%s1030_s1 + $0x40] sm:$0xff]  ;;  %v248_v9 = vld [vmem:[%s1030_s1 + $0x38] sm:$0xff]  ;;  %s878_s29 = scalar_lea.vmem %s1029_s0, %s606_s22  ;;  %s960_s11 = scalar_lea.vmem %s1032_s3, %s602_s5 }
   0xe   : > { %282 = vmatprep.subr.mxu0 %v688_v1  ;;  %608 = vmatprep.subr.mxu1 %v688_v1  ;;  %v247_v10 = vld [vmem:[%s1030_s1 + $0x30] sm:$0xff]  ;;  %v246_v11 = vld [vmem:[%s1030_s1 + $0x28] sm:$0xff]  ;;  %v245_v12 = vld [vmem:[%s1030_s1 + $0x20] sm:$0xff] }
   0xf   : > { %283 = vmatpush1.msra.mxu0 %v255_v2  ;;  %640 = vmatpush1.msra.mxu1 %v255_v2  ;;  %v244_v13 = vld [vmem:[%s1030_s1 + $0x18] sm:$0xff]  ;;  %v243_v14 = vld [vmem:[%s1030_s1 + $0x10] sm:$0xff]  ;;  %v242_v15 = vld [vmem:[%s1030_s1 + $0x8] sm:$0xff] }
  0x10   : > { %284 = vmatprep.subr.mxu0 %v688_v1  ;;  %609 = vmatprep.subr.mxu1 %v688_v1  ;;  %v241_v16 = vld [vmem:[%s1030_s1] sm:$0xff]  ;;  %v272_v17 = vld [vmem:[%s1030_s1 + $0xf8] sm:$0xff]  ;;  %v271_v18 = vld [vmem:[%s1030_s1 + $0xf0] sm:$0xff] }
  0x11   : > { %285 = vmatpush1.msra.mxu0 %v254_v3  ;;  %641 = vmatpush1.msra.mxu1 %v254_v3  ;;  %v270_v19 = vld [vmem:[%s1030_s1 + $0xe8] sm:$0xff]  ;;  %v269_v20 = vld [vmem:[%s1030_s1 + $0xe0] sm:$0xff]  ;;  %v268_v21 = vld [vmem:[%s1030_s1 + $0xd8] sm:$0xff] }
  0x12   : > { %286 = vmatprep.subr.mxu0 %v688_v1  ;;  %610 = vmatprep.subr.mxu1 %v688_v1  ;;  %v267_v22 = vld [vmem:[%s1030_s1 + $0xd0] sm:$0xff]  ;;  %v266_v23 = vld [vmem:[%s1030_s1 + $0xc8] sm:$0xff]  ;;  %v265_v24 = vld [vmem:[%s1030_s1 + $0xc0] sm:$0xff] }
  0x13   : > { %287 = vmatpush1.msra.mxu0 %v253_v4  ;;  %642 = vmatpush1.msra.mxu1 %v253_v4  ;;  %v264_v25 = vld [vmem:[%s1030_s1 + $0xb8] sm:$0xff]  ;;  %v263_v26 = vld [vmem:[%s1030_s1 + $0xb0] sm:$0xff]  ;;  %v262_v27 = vld [vmem:[%s1030_s1 + $0xa8] sm:$0xff] }
  0x14   : > { %288 = vmatprep.subr.mxu0 %v688_v1  ;;  %611 = vmatprep.subr.mxu1 %v688_v1  ;;  %v261_v28 = vld [vmem:[%s1030_s1 + $0xa0] sm:$0xff]  ;;  %v260_v29 = vld [vmem:[%s1030_s1 + $0x98] sm:$0xff]  ;;  %v259_v30 = vld [vmem:[%s1030_s1 + $0x90] sm:$0xff] }
  0x15   : > { %289 = vmatpush1.msra.mxu0 %v252_v5  ;;  %643 = vmatpush1.msra.mxu1 %v252_v5  ;;  %v258_v31 = vld [vmem:[%s1030_s1 + $0x88] sm:$0xff]  ;;  %v257_v32 = vld [vmem:[%s1030_s1 + $0x80] sm:$0xff]  ;;  %v180_v37 = vld [vmem:[%s878_s29 + $0x18] sm:$0xff] }
  0x16   : > { %290 = vmatprep.subr.mxu0 %v688_v1  ;;  %612 = vmatprep.subr.mxu1 %v688_v1  ;;  %v178_v33 = vld [vmem:[%s878_s29 + $0x8] sm:$0xff]  ;;  %v177_v35 = vld [vmem:[%s878_s29] sm:$0xff]  ;;  %v212_v38 = vld [vmem:[%s878_s29 + $0x118] sm:$0xff] }
  0x17   : > { %291 = vmatpush1.msra.mxu0 %v251_v6  ;;  %644 = vmatpush1.msra.mxu1 %v251_v6  ;;  %v210_v34 = vld [vmem:[%s878_s29 + $0x108] sm:$0xff]  ;;  %v209_v36 = vld [vmem:[%s878_s29 + $0x100] sm:$0xff]  ;;  %v179_v39 = vld [vmem:[%s878_s29 + $0x10] sm:$0xff] }
  0x18   : > { %292 = vmatprep.subr.mxu0 %v688_v1  ;;  %613 = vmatprep.subr.mxu1 %v688_v1  ;;  %v211_v40 = vld [vmem:[%s878_s29 + $0x110] sm:$0xff]  ;;  %v182_v41 = vld [vmem:[%s878_s29 + $0x28] sm:$0xff]  ;;  %v181_v43 = vld [vmem:[%s878_s29 + $0x20] sm:$0xff] }
  0x19   : > { %293 = vmatpush1.msra.mxu0 %v250_v7  ;;  %645 = vmatpush1.msra.mxu1 %v250_v7  ;;  %v214_v42 = vld [vmem:[%s878_s29 + $0x128] sm:$0xff]  ;;  %v213_v44 = vld [vmem:[%s878_s29 + $0x120] sm:$0xff]  ;;  %v184_v45 = vld [vmem:[%s878_s29 + $0x38] sm:$0xff] }
  0x1a   : > { %294 = vmatprep.subr.mxu0 %v688_v1  ;;  %614 = vmatprep.subr.mxu1 %v688_v1  ;;  %v216_v46 = vld [vmem:[%s878_s29 + $0x138] sm:$0xff]  ;;  %v183_v47 = vld [vmem:[%s878_s29 + $0x30] sm:$0xff]  ;;  %v186_v49 = vld [vmem:[%s878_s29 + $0x48] sm:$0xff] }
  0x1b   : > { %295 = vmatpush1.msra.mxu0 %v249_v8  ;;  %646 = vmatpush1.msra.mxu1 %v249_v8  ;;  %v215_v48 = vld [vmem:[%s878_s29 + $0x130] sm:$0xff]  ;;  %v218_v50 = vld [vmem:[%s878_s29 + $0x148] sm:$0xff]  ;;  %v185_v51 = vld [vmem:[%s878_s29 + $0x40] sm:$0xff] }
  0x1c   : > { %296 = vmatprep.subr.mxu0 %v688_v1  ;;  %615 = vmatprep.subr.mxu1 %v688_v1  ;;  %v217_v52 = vld [vmem:[%s878_s29 + $0x140] sm:$0xff]  ;;  %v188_v53 = vld [vmem:[%s878_s29 + $0x58] sm:$0xff]  ;;  %v187_v55 = vld [vmem:[%s878_s29 + $0x50] sm:$0xff] }
  0x1d   : > { %297 = vmatpush1.msra.mxu0 %v248_v9  ;;  %647 = vmatpush1.msra.mxu1 %v248_v9  ;;  %v220_v54 = vld [vmem:[%s878_s29 + $0x158] sm:$0xff]  ;;  %v219_v56 = vld [vmem:[%s878_s29 + $0x150] sm:$0xff]  ;;  %v190_v57 = vld [vmem:[%s878_s29 + $0x68] sm:$0xff] }
  0x1e   : > { %298 = vmatprep.subr.mxu0 %v688_v1  ;;  %616 = vmatprep.subr.mxu1 %v688_v1  ;;  %v222_v58 = vld [vmem:[%s878_s29 + $0x168] sm:$0xff]  ;;  %v189_v59 = vld [vmem:[%s878_s29 + $0x60] sm:$0xff]  ;;  %v192_v61 = vld [vmem:[%s878_s29 + $0x78] sm:$0xff] }
  0x1f   : > { %299 = vmatpush1.msra.mxu0 %v247_v10  ;;  %648 = vmatpush1.msra.mxu1 %v247_v10  ;;  %v221_v60 = vld [vmem:[%s878_s29 + $0x160] sm:$0xff]  ;;  %v224_v62 = vld [vmem:[%s878_s29 + $0x178] sm:$0xff]  ;;  %v191_v63 = vld [vmem:[%s878_s29 + $0x70] sm:$0xff] }
  0x20   : > { %300 = vmatprep.subr.mxu0 %v688_v1  ;;  %617 = vmatprep.subr.mxu1 %v688_v1  ;;  %v223_v0 = vld [vmem:[%s878_s29 + $0x170] sm:$0xff]  ;;  %v226_v2 = vld [vmem:[%s878_s29 + $0x188] sm:$0xff]  ;;  %v193_v3 = vld [vmem:[%s878_s29 + $0x80] sm:$0xff] }
  0x21   : > { %301 = vmatpush1.msra.mxu0 %v246_v11  ;;  %649 = vmatpush1.msra.mxu1 %v246_v11  ;;  %v225_v4 = vld [vmem:[%s878_s29 + $0x180] sm:$0xff]  ;;  %v196_v5 = vld [vmem:[%s878_s29 + $0x98] sm:$0xff]  ;;  %v195_v7 = vld [vmem:[%s878_s29 + $0x90] sm:$0xff] }
  0x22   : > { %302 = vmatprep.subr.mxu0 %v688_v1  ;;  %618 = vmatprep.subr.mxu1 %v688_v1  ;;  %v228_v6 = vld [vmem:[%s878_s29 + $0x198] sm:$0xff]  ;;  %v227_v8 = vld [vmem:[%s878_s29 + $0x190] sm:$0xff]  ;;  %v198_v9 = vld [vmem:[%s878_s29 + $0xa8] sm:$0xff] }
  0x23   : > { %303 = vmatpush1.msra.mxu0 %v245_v12  ;;  %650 = vmatpush1.msra.mxu1 %v245_v12  ;;  %v230_v10 = vld [vmem:[%s878_s29 + $0x1a8] sm:$0xff]  ;;  %v197_v11 = vld [vmem:[%s878_s29 + $0xa0] sm:$0xff] }
  0x24   : > { %304 = vmatprep.subr.mxu0 %v688_v1  ;;  %619 = vmatprep.subr.mxu1 %v688_v1  ;;  %v229_v12 = vld [vmem:[%s878_s29 + $0x1a0] sm:$0xff] }
  0x25   : > { %305 = vmatpush1.msra.mxu0 %v244_v13  ;;  %651 = vmatpush1.msra.mxu1 %v244_v13  ;;  %v200_v13 = vld [vmem:[%s878_s29 + $0xb8] sm:$0xff] }
  0x26   : > { %306 = vmatprep.subr.mxu0 %v688_v1  ;;  %620 = vmatprep.subr.mxu1 %v688_v1 }
  0x27   : > { %307 = vmatpush1.msra.mxu0 %v243_v14  ;;  %652 = vmatpush1.msra.mxu1 %v243_v14  ;;  %v232_v14 = vld [vmem:[%s878_s29 + $0x1b8] sm:$0xff] }
  0x28   : > { %308 = vmatprep.subr.mxu0 %v688_v1  ;;  %621 = vmatprep.subr.mxu1 %v688_v1 }
  0x29   : > { %309 = vmatpush1.msra.mxu0 %v242_v15  ;;  %653 = vmatpush1.msra.mxu1 %v242_v15  ;;  %v199_v15 = vld [vmem:[%s878_s29 + $0xb0] sm:$0xff] }
  0x2a   : > { %310 = vmatprep.subr.mxu0 %v688_v1  ;;  %622 = vmatprep.subr.mxu1 %v688_v1 }
  0x2b   : > { %311 = vmatpush1.msra.mxu0 %v241_v16  ;;  %654 = vmatpush1.msra.mxu1 %v241_v16  ;;  %v231_v16 = vld [vmem:[%s878_s29 + $0x1b0] sm:$0xff] }
  0x2c   : > { %312 = vmatprep.subr.mxu0 %v688_v1  ;;  %623 = vmatprep.subr.mxu1 %v688_v1 }
  0x2d   : > { %313 = vmatpush2.msra.mxu0 %v272_v17  ;;  %655 = vmatpush2.msra.mxu1 %v272_v17  ;;  %v202_v17 = vld [vmem:[%s878_s29 + $0xc8] sm:$0xff] }
  0x2e   : > { %314 = vmatprep.subr.mxu0 %v688_v1  ;;  %624 = vmatprep.subr.mxu1 %v688_v1 }
  0x2f   : > { %315 = vmatpush2.msra.mxu0 %v271_v18  ;;  %656 = vmatpush2.msra.mxu1 %v271_v18  ;;  %v234_v18 = vld [vmem:[%s878_s29 + $0x1c8] sm:$0xff] }
  0x30   : > { %316 = vmatprep.subr.mxu0 %v688_v1  ;;  %625 = vmatprep.subr.mxu1 %v688_v1 }
  0x31   : > { %317 = vmatpush2.msra.mxu0 %v270_v19  ;;  %657 = vmatpush2.msra.mxu1 %v270_v19  ;;  %v201_v19 = vld [vmem:[%s878_s29 + $0xc0] sm:$0xff] }
  0x32   : > { %318 = vmatprep.subr.mxu0 %v688_v1  ;;  %626 = vmatprep.subr.mxu1 %v688_v1 }
  0x33   : > { %319 = vmatpush2.msra.mxu0 %v269_v20  ;;  %658 = vmatpush2.msra.mxu1 %v269_v20  ;;  %v233_v20 = vld [vmem:[%s878_s29 + $0x1c0] sm:$0xff] }
  0x34   : > { %320 = vmatprep.subr.mxu0 %v688_v1  ;;  %627 = vmatprep.subr.mxu1 %v688_v1 }
  0x35   : > { %321 = vmatpush2.msra.mxu0 %v268_v21  ;;  %659 = vmatpush2.msra.mxu1 %v268_v21  ;;  %v204_v21 = vld [vmem:[%s878_s29 + $0xd8] sm:$0xff] }
  0x36   : > { %322 = vmatprep.subr.mxu0 %v688_v1  ;;  %628 = vmatprep.subr.mxu1 %v688_v1 }
  0x37   : > { %323 = vmatpush2.msra.mxu0 %v267_v22  ;;  %660 = vmatpush2.msra.mxu1 %v267_v22  ;;  %v236_v22 = vld [vmem:[%s878_s29 + $0x1d8] sm:$0xff] }
  0x38   : > { %324 = vmatprep.subr.mxu0 %v688_v1  ;;  %629 = vmatprep.subr.mxu1 %v688_v1 }
  0x39   : > { %325 = vmatpush2.msra.mxu0 %v266_v23  ;;  %661 = vmatpush2.msra.mxu1 %v266_v23  ;;  %v203_v23 = vld [vmem:[%s878_s29 + $0xd0] sm:$0xff] }
  0x3a   : > { %326 = vmatprep.subr.mxu0 %v688_v1  ;;  %630 = vmatprep.subr.mxu1 %v688_v1 }
  0x3b   : > { %327 = vmatpush2.msra.mxu0 %v265_v24  ;;  %662 = vmatpush2.msra.mxu1 %v265_v24  ;;  %v235_v24 = vld [vmem:[%s878_s29 + $0x1d0] sm:$0xff] }
  0x3c   : > { %328 = vmatprep.subr.mxu0 %v688_v1  ;;  %631 = vmatprep.subr.mxu1 %v688_v1 }
  0x3d   : > { %329 = vmatpush2.msra.mxu0 %v264_v25  ;;  %663 = vmatpush2.msra.mxu1 %v264_v25  ;;  %v206_v25 = vld [vmem:[%s878_s29 + $0xe8] sm:$0xff] }
  0x3e   : > { %330 = vmatprep.subr.mxu0 %v688_v1  ;;  %632 = vmatprep.subr.mxu1 %v688_v1 }
  0x3f   : > { %331 = vmatpush2.msra.mxu0 %v263_v26  ;;  %664 = vmatpush2.msra.mxu1 %v263_v26  ;;  %v238_v26 = vld [vmem:[%s878_s29 + $0x1e8] sm:$0xff] }
  0x40   : > { %332 = vmatprep.subr.mxu0 %v688_v1  ;;  %633 = vmatprep.subr.mxu1 %v688_v1 }
  0x41   : > { %333 = vmatpush2.msra.mxu0 %v262_v27  ;;  %665 = vmatpush2.msra.mxu1 %v262_v27  ;;  %v205_v27 = vld [vmem:[%s878_s29 + $0xe0] sm:$0xff] }
  0x42   : > { %334 = vmatprep.subr.mxu0 %v688_v1  ;;  %634 = vmatprep.subr.mxu1 %v688_v1 }
  0x43   : > { %335 = vmatpush2.msra.mxu0 %v261_v28  ;;  %666 = vmatpush2.msra.mxu1 %v261_v28  ;;  %v237_v28 = vld [vmem:[%s878_s29 + $0x1e0] sm:$0xff] }
  0x44   : > { %336 = vmatprep.subr.mxu0 %v688_v1  ;;  %635 = vmatprep.subr.mxu1 %v688_v1 }
  0x45   : > { %337 = vmatpush2.msra.mxu0 %v260_v29  ;;  %667 = vmatpush2.msra.mxu1 %v260_v29  ;;  %v208_v29 = vld [vmem:[%s878_s29 + $0xf8] sm:$0xff] }
  0x46   : > { %338 = vmatprep.subr.mxu0 %v688_v1  ;;  %636 = vmatprep.subr.mxu1 %v688_v1 }
  0x47   : > { %339 = vmatpush2.msra.mxu0 %v259_v30  ;;  %668 = vmatpush2.msra.mxu1 %v259_v30  ;;  %v240_v30 = vld [vmem:[%s878_s29 + $0x1f8] sm:$0xff] }
  0x48   : > { %340 = vmatprep.subr.mxu0 %v688_v1  ;;  %637 = vmatprep.subr.mxu1 %v688_v1 }
  0x49   : > { %341 = vmatpush2.msra.mxu0 %v258_v31  ;;  %669 = vmatpush2.msra.mxu1 %v258_v31  ;;  %v207_v31 = vld [vmem:[%s878_s29 + $0xf0] sm:$0xff] }
  0x4a   : > { %342 = vmatprep.subr.mxu0 %v688_v1  ;;  %638 = vmatprep.subr.mxu1 %v688_v1  ;;  %v194_v1 = vld [vmem:[%s878_s29 + $0x88] sm:$0xff] }
  0x4b   : > { %343 = vmatpush2.msra.mxu0 %v257_v32  ;;  %670 = vmatpush2.msra.mxu1 %v257_v32  ;;  %v239_v32 = vld [vmem:[%s878_s29 + $0x1f0] sm:$0xff] }
  0x4c   : > { %344 = vmatprep.mubr.f32.mxu0 %v178_v33  ;;  %424 = vmatprep.mubr.f32.mxu1 %v210_v34  ;;  %v955_v33 = vld [vmem:[%s1031_s2] ss:$0 sm:$0xff] }
  0x4d   : > { %345 = vmatmul.mubr.f32.vlgmr.msra.gmra.mxu0 %v177_v35  ;;  %425 = vmatmul.mubr.f32.vlgmr.msra.gmra.mxu1 %v209_v36 }
  0x4e   : > { %349 = vmatprep.mubr.f32.mxu0 %v180_v37  ;;  %429 = vmatprep.mubr.f32.mxu1 %v212_v38 }
  0x51   : > { %350 = vmatmul.mubr.f32.gmra.mxu0 %v179_v39  ;;  %430 = vmatmul.mubr.f32.gmra.mxu1 %v211_v40 }
  0x52   : > { %354 = vmatprep.mubr.f32.mxu0 %v182_v41  ;;  %434 = vmatprep.mubr.f32.mxu1 %v214_v42 }
  0x55   : > { %355 = vmatmul.mubr.f32.gmra.mxu0 %v181_v43  ;;  %435 = vmatmul.mubr.f32.gmra.mxu1 %v213_v44 }
  0x56   : > { %359 = vmatprep.mubr.f32.mxu0 %v184_v45  ;;  %439 = vmatprep.mubr.f32.mxu1 %v216_v46 }
  0x59   : > { %360 = vmatmul.mubr.f32.gmra.mxu0 %v183_v47  ;;  %440 = vmatmul.mubr.f32.gmra.mxu1 %v215_v48 }
  0x5a   : > { %364 = vmatprep.mubr.f32.mxu0 %v186_v49  ;;  %444 = vmatprep.mubr.f32.mxu1 %v218_v50 }
  0x5d   : > { %365 = vmatmul.mubr.f32.gmra.mxu0 %v185_v51  ;;  %445 = vmatmul.mubr.f32.gmra.mxu1 %v217_v52 }
  0x5e   : > { %369 = vmatprep.mubr.f32.mxu0 %v188_v53  ;;  %449 = vmatprep.mubr.f32.mxu1 %v220_v54 }
  0x61   : > { %370 = vmatmul.mubr.f32.gmra.mxu0 %v187_v55  ;;  %450 = vmatmul.mubr.f32.gmra.mxu1 %v219_v56 }
  0x62   : > { %374 = vmatprep.mubr.f32.mxu0 %v190_v57  ;;  %454 = vmatprep.mubr.f32.mxu1 %v222_v58 }
  0x65   : > { %375 = vmatmul.mubr.f32.gmra.mxu0 %v189_v59  ;;  %455 = vmatmul.mubr.f32.gmra.mxu1 %v221_v60 }
  0x66   : > { %379 = vmatprep.mubr.f32.mxu0 %v192_v61  ;;  %459 = vmatprep.mubr.f32.mxu1 %v224_v62 }
  0x69   : > { %380 = vmatmul.mubr.f32.gmra.mxu0 %v191_v63  ;;  %460 = vmatmul.mubr.f32.gmra.mxu1 %v223_v0 }
  0x6a   : > { %384 = vmatprep.mubr.f32.mxu0 %v194_v1  ;;  %464 = vmatprep.mubr.f32.mxu1 %v226_v2 }
  0x6d   : > { %385 = vmatmul.mubr.f32.gmra.mxu0 %v193_v3  ;;  %465 = vmatmul.mubr.f32.gmra.mxu1 %v225_v4 }
  0x6e   : > { %389 = vmatprep.mubr.f32.mxu0 %v196_v5  ;;  %469 = vmatprep.mubr.f32.mxu1 %v228_v6 }
  0x71   : > { %390 = vmatmul.mubr.f32.gmra.mxu0 %v195_v7  ;;  %470 = vmatmul.mubr.f32.gmra.mxu1 %v227_v8 }
  0x72   : > { %394 = vmatprep.mubr.f32.mxu0 %v198_v9  ;;  %474 = vmatprep.mubr.f32.mxu1 %v230_v10 }
  0x75   : > { %395 = vmatmul.mubr.f32.gmra.mxu0 %v197_v11  ;;  %475 = vmatmul.mubr.f32.gmra.mxu1 %v229_v12 }
  0x76   : > { %399 = vmatprep.mubr.f32.mxu0 %v200_v13  ;;  %479 = vmatprep.mubr.f32.mxu1 %v232_v14 }
  0x79   : > { %400 = vmatmul.mubr.f32.gmra.mxu0 %v199_v15  ;;  %480 = vmatmul.mubr.f32.gmra.mxu1 %v231_v16 }
  0x7a   : > { %404 = vmatprep.mubr.f32.mxu0 %v202_v17  ;;  %484 = vmatprep.mubr.f32.mxu1 %v234_v18 }
  0x7d   : > { %405 = vmatmul.mubr.f32.gmra.mxu0 %v201_v19  ;;  %485 = vmatmul.mubr.f32.gmra.mxu1 %v233_v20 }
  0x7e   : > { %409 = vmatprep.mubr.f32.mxu0 %v204_v21  ;;  %489 = vmatprep.mubr.f32.mxu1 %v236_v22 }
  0x81   : > { %410 = vmatmul.mubr.f32.gmra.mxu0 %v203_v23  ;;  %490 = vmatmul.mubr.f32.gmra.mxu1 %v235_v24 }
  0x82   : > { %414 = vmatprep.mubr.f32.mxu0 %v206_v25  ;;  %494 = vmatprep.mubr.f32.mxu1 %v238_v26 }
  0x85   : > { %415 = vmatmul.mubr.f32.gmra.mxu0 %v205_v27  ;;  %495 = vmatmul.mubr.f32.gmra.mxu1 %v237_v28 }
  0x86   : > { %419 = vmatprep.mubr.f32.mxu0 %v208_v29  ;;  %499 = vmatprep.mubr.f32.mxu1 %v240_v30 }
  0x89   : > { %420 = vmatmul.mubr.f32.gmra.mxu0 %v207_v31  ;;  %500 = vmatmul.mubr.f32.gmra.mxu1 %v239_v32 }
 0x10d   : > { %v346_v34 = vpop.f32.mrf.mxu0  ;;  %v426_v35 = vpop.f32.mrf.mxu1 }
 0x10e   : > { %v347_v36 = vadd.f32 %v955_v33, %v346_v34  ;;  %v427_v37 = vadd.f32 %v955_v33, %v426_v35 }
 0x10f   : > { %v348_v38 = vpop.f32.mrf.mxu0  ;;  %v428_v39 = vpop.f32.mrf.mxu1 }
 0x110   : > { %505 = vst [vmem:[%s960_s11] sm:$0xff] %v347_v36  ;;  %521 = vst [vmem:[%s960_s11 + $0x80] sm:$0xff] %v427_v37 }
 0x111   : > { %v351_v40 = vpop.f32.mrf.mxu0  ;;  %v431_v41 = vpop.f32.mrf.mxu1 }
 0x112   : > { %v352_v42 = vadd.f32 %v955_v33, %v351_v40  ;;  %v432_v43 = vadd.f32 %v955_v33, %v431_v41 }
 0x113   : > { %v353_v44 = vpop.f32.mrf.mxu0  ;;  %v433_v45 = vpop.f32.mrf.mxu1 }
 0x114   : > { %506 = vst [vmem:[%s960_s11 + $0x8] sm:$0xff] %v352_v42  ;;  %522 = vst [vmem:[%s960_s11 + $0x88] sm:$0xff] %v432_v43 }
 0x115   : > { %v356_v46 = vpop.f32.mrf.mxu0  ;;  %v436_v47 = vpop.f32.mrf.mxu1 }
 0x116   : > { %v357_v48 = vadd.f32 %v955_v33, %v356_v46  ;;  %v437_v49 = vadd.f32 %v955_v33, %v436_v47 }
 0x117   : > { %v358_v50 = vpop.f32.mrf.mxu0  ;;  %v438_v51 = vpop.f32.mrf.mxu1 }
 0x118   : > { %507 = vst [vmem:[%s960_s11 + $0x10] sm:$0xff] %v357_v48  ;;  %523 = vst [vmem:[%s960_s11 + $0x90] sm:$0xff] %v437_v49 }
 0x119   : > { %v361_v52 = vpop.f32.mrf.mxu0  ;;  %v441_v53 = vpop.f32.mrf.mxu1 }
 0x11a   : > { %v362_v54 = vadd.f32 %v955_v33, %v361_v52  ;;  %v442_v55 = vadd.f32 %v955_v33, %v441_v53 }
 0x11b   : > { %v363_v56 = vpop.f32.mrf.mxu0  ;;  %v443_v57 = vpop.f32.mrf.mxu1 }
 0x11c   : > { %508 = vst [vmem:[%s960_s11 + $0x18] sm:$0xff] %v362_v54  ;;  %524 = vst [vmem:[%s960_s11 + $0x98] sm:$0xff] %v442_v55 }
 0x11d   : > { %v366_v58 = vpop.f32.mrf.mxu0  ;;  %v446_v59 = vpop.f32.mrf.mxu1 }
 0x11e   : > { %v367_v60 = vadd.f32 %v955_v33, %v366_v58  ;;  %v447_v61 = vadd.f32 %v955_v33, %v446_v59 }
 0x11f   : > { %v368_v62 = vpop.f32.mrf.mxu0  ;;  %v448_v63 = vpop.f32.mrf.mxu1 }
 0x120   : > { %509 = vst [vmem:[%s960_s11 + $0x20] sm:$0xff] %v367_v60  ;;  %525 = vst [vmem:[%s960_s11 + $0xa0] sm:$0xff] %v447_v61 }
 0x121   : > { %v371_v0 = vpop.f32.mrf.mxu0  ;;  %v451_v1 = vpop.f32.mrf.mxu1 }
 0x122   : > { %v372_v2 = vadd.f32 %v955_v33, %v371_v0  ;;  %v452_v3 = vadd.f32 %v955_v33, %v451_v1 }
 0x123   : > { %v373_v4 = vpop.f32.mrf.mxu0  ;;  %v453_v5 = vpop.f32.mrf.mxu1 }
 0x124   : > { %510 = vst [vmem:[%s960_s11 + $0x28] sm:$0xff] %v372_v2  ;;  %526 = vst [vmem:[%s960_s11 + $0xa8] sm:$0xff] %v452_v3 }
 0x125   : > { %v376_v6 = vpop.f32.mrf.mxu0  ;;  %v456_v7 = vpop.f32.mrf.mxu1 }
 0x126   : > { %v377_v8 = vadd.f32 %v955_v33, %v376_v6  ;;  %v457_v9 = vadd.f32 %v955_v33, %v456_v7 }
 0x127   : > { %v378_v10 = vpop.f32.mrf.mxu0  ;;  %v458_v11 = vpop.f32.mrf.mxu1 }
 0x128   : > { %511 = vst [vmem:[%s960_s11 + $0x30] sm:$0xff] %v377_v8  ;;  %527 = vst [vmem:[%s960_s11 + $0xb0] sm:$0xff] %v457_v9 }
 0x129   : > { %v381_v12 = vpop.f32.mrf.mxu0  ;;  %v461_v13 = vpop.f32.mrf.mxu1 }
 0x12a   : > { %v382_v14 = vadd.f32 %v955_v33, %v381_v12  ;;  %v462_v15 = vadd.f32 %v955_v33, %v461_v13 }
 0x12b   : > { %v383_v16 = vpop.f32.mrf.mxu0  ;;  %v463_v17 = vpop.f32.mrf.mxu1 }
 0x12c   : > { %512 = vst [vmem:[%s960_s11 + $0x38] sm:$0xff] %v382_v14  ;;  %528 = vst [vmem:[%s960_s11 + $0xb8] sm:$0xff] %v462_v15 }
 0x12d   : > { %v386_v18 = vpop.f32.mrf.mxu0  ;;  %v466_v19 = vpop.f32.mrf.mxu1 }
 0x12e   : > { %v387_v20 = vadd.f32 %v955_v33, %v386_v18  ;;  %v467_v21 = vadd.f32 %v955_v33, %v466_v19 }
 0x12f   : > { %v388_v22 = vpop.f32.mrf.mxu0  ;;  %v468_v23 = vpop.f32.mrf.mxu1 }
 0x130   : > { %513 = vst [vmem:[%s960_s11 + $0x40] sm:$0xff] %v387_v20  ;;  %529 = vst [vmem:[%s960_s11 + $0xc0] sm:$0xff] %v467_v21 }
 0x131   : > { %v391_v24 = vpop.f32.mrf.mxu0  ;;  %v471_v25 = vpop.f32.mrf.mxu1 }
 0x132   : > { %v392_v26 = vadd.f32 %v955_v33, %v391_v24  ;;  %v472_v27 = vadd.f32 %v955_v33, %v471_v25 }
 0x133   : > { %v393_v28 = vpop.f32.mrf.mxu0  ;;  %v473_v29 = vpop.f32.mrf.mxu1 }
 0x134   : > { %514 = vst [vmem:[%s960_s11 + $0x48] sm:$0xff] %v392_v26  ;;  %530 = vst [vmem:[%s960_s11 + $0xc8] sm:$0xff] %v472_v27 }
 0x135   : > { %v396_v30 = vpop.f32.mrf.mxu0  ;;  %v476_v31 = vpop.f32.mrf.mxu1 }
 0x136   : > { %v397_v32 = vadd.f32 %v955_v33, %v396_v30  ;;  %v477_v34 = vadd.f32 %v955_v33, %v476_v31 }
 0x137   : > { %v398_v35 = vpop.f32.mrf.mxu0  ;;  %v478_v36 = vpop.f32.mrf.mxu1 }
 0x138   : > { %515 = vst [vmem:[%s960_s11 + $0x50] sm:$0xff] %v397_v32  ;;  %531 = vst [vmem:[%s960_s11 + $0xd0] sm:$0xff] %v477_v34 }
 0x139   : > { %v401_v37 = vpop.f32.mrf.mxu0  ;;  %v481_v38 = vpop.f32.mrf.mxu1 }
 0x13a   : > { %v402_v39 = vadd.f32 %v955_v33, %v401_v37  ;;  %v482_v40 = vadd.f32 %v955_v33, %v481_v38 }
 0x13b   : > { %v403_v41 = vpop.f32.mrf.mxu0  ;;  %v483_v42 = vpop.f32.mrf.mxu1 }
 0x13c   : > { %516 = vst [vmem:[%s960_s11 + $0x58] sm:$0xff] %v402_v39  ;;  %532 = vst [vmem:[%s960_s11 + $0xd8] sm:$0xff] %v482_v40 }
 0x13d   : > { %v406_v43 = vpop.f32.mrf.mxu0  ;;  %v486_v44 = vpop.f32.mrf.mxu1 }
 0x13e   : > { %v407_v45 = vadd.f32 %v955_v33, %v406_v43  ;;  %v487_v46 = vadd.f32 %v955_v33, %v486_v44 }
 0x13f   : > { %v408_v47 = vpop.f32.mrf.mxu0  ;;  %v488_v48 = vpop.f32.mrf.mxu1 }
 0x140   : > { %517 = vst [vmem:[%s960_s11 + $0x60] sm:$0xff] %v407_v45  ;;  %533 = vst [vmem:[%s960_s11 + $0xe0] sm:$0xff] %v487_v46 }
 0x141   : > { %v411_v49 = vpop.f32.mrf.mxu0  ;;  %v491_v50 = vpop.f32.mrf.mxu1 }
 0x142   : > { %v412_v51 = vadd.f32 %v955_v33, %v411_v49  ;;  %v492_v52 = vadd.f32 %v955_v33, %v491_v50 }
 0x143   : > { %v413_v53 = vpop.f32.mrf.mxu0  ;;  %v493_v54 = vpop.f32.mrf.mxu1 }
 0x144   : > { %518 = vst [vmem:[%s960_s11 + $0x68] sm:$0xff] %v412_v51  ;;  %534 = vst [vmem:[%s960_s11 + $0xe8] sm:$0xff] %v492_v52 }
 0x145   : > { %v416_v55 = vpop.f32.mrf.mxu0  ;;  %v496_v56 = vpop.f32.mrf.mxu1 }
 0x146   : > { %v417_v57 = vadd.f32 %v955_v33, %v416_v55  ;;  %v497_v58 = vadd.f32 %v955_v33, %v496_v56 }
 0x147   : > { %v418_v59 = vpop.f32.mrf.mxu0  ;;  %v498_v60 = vpop.f32.mrf.mxu1 }
 0x148   : > { %519 = vst [vmem:[%s960_s11 + $0x70] sm:$0xff] %v417_v57  ;;  %535 = vst [vmem:[%s960_s11 + $0xf0] sm:$0xff] %v497_v58 }
 0x149   : > { %v421_v61 = vpop.f32.mrf.mxu0  ;;  %v501_v62 = vpop.f32.mrf.mxu1 }
 0x14a   : > { %v422_v63 = vadd.f32 %v955_v33, %v421_v61  ;;  %v502_v0 = vadd.f32 %v955_v33, %v501_v62 }
 0x14b   : > { %v423_v1 = vpop.f32.mrf.mxu0  ;;  %v503_v2 = vpop.f32.mrf.mxu1 }
 0x14c   : > { %520 = vst [vmem:[%s960_s11 + $0x78] sm:$0xff] %v422_v63  ;;  %536 = vst [vmem:[%s960_s11 + $0xf8] sm:$0xff] %v502_v0 }
 0x14d PF: > { %s13_s12 = sadd.s32 1, %s686_s12  }
 0x14e   : > { %p10_p4 = scmp.ge.s32.totalorder %s13_s12, 4  }
 0x150   :  { %12 = sbr.rel (!%p10_p4) target bundleno = 1 (0x1), region = 62 }

</bundles_post_ra>
